<compile_context>
chip_gen: v7x
topology: tpu7x:2x2x1
jax: 0.10.0
libtpu: 0.0.40
codegen_flags: <defaults>
</compile_context>

<pallas_src>
import functools
import math

import jax
import jax.numpy as jnp
from jax.experimental import pallas as pl
from jax.experimental.pallas import tpu as pltpu

PAD = 0

_BIG_WEIGHT_NAMES = ('wqkvT', 'wfcT', 'w1T', 'w2T')
_SMALL_PARAM_NAMES = ('bqkv', 'bfc', 'g1', 'be1', 'b1', 'b2', 'g2', 'be2')


# ---------------------------------------------------------------------------
# Kernel
# ---------------------------------------------------------------------------
def encoder_stack_kernel(x_ref, npm_ref, kbias_ref,
                         wqkvT_ref, wfcT_ref, w1T_ref, w2T_ref, small_ref,
                         out_ref, attn_buf,
                         *, n_head, d_k, d_v, seg_off, ffn_chunk, eps=1e-5):
    layer = pl.program_id(1)

    # Layer 0: seed the VMEM-resident output block with the embedded input.
    # For later layers the block already holds the previous layer's output.
    @pl.when(layer == 0)
    def _():
        out_ref[...] = x_ref[...]

    BB, L, D = out_ref.shape
    Hk = n_head * d_k
    Hv = n_head * d_v
    W = 2 * Hk + Hv
    d_inner = w1T_ref.shape[-1]

    # Slice into the packed small-parameter vector (offsets are 128-aligned).
    def seg(name, width, start=0):
        off = seg_off[name] + start
        return small_ref[:, off:off + width]          # (1, width) f32

    x = out_ref[...]                                  # (BB, L, D) f32 carry
    npm = npm_ref[...]                                # (BB*L, 1)  f32
    kbias = kbias_ref[...]                            # (BB, 1, L) f32 (-1e9 on pads)

    x2 = x.reshape(BB * L, D)

    # ---- fused Q|K|V projection (1/sqrt(d_k) pre-folded into Q weights) ----
    qkv = jnp.dot(x2.astype(jnp.bfloat16), wqkvT_ref[...],
                  preferred_element_type=jnp.float32) + seg('bqkv', W)
    qkv3 = qkv.reshape(BB, L, W)                      # (BB, L, 2Hk+Hv) f32

    # ---- per-head scaled dot-product attention (batched over BB) ----------
    # Each head's output goes straight into the VMEM scratch at its column
    # offset -- no Python-list + concatenate, only one head output live.
    for h in range(n_head):
        qh = qkv3[:, :, h * d_k:(h + 1) * d_k].astype(jnp.bfloat16)
        kh = qkv3[:, :, Hk + h * d_k:Hk + (h + 1) * d_k].astype(jnp.bfloat16)
        vh = qkv3[:, :, 2 * Hk + h * d_v:2 * Hk + (h + 1) * d_v].astype(jnp.bfloat16)

        s = jnp.einsum('bld,bmd->blm', qh, kh,
                       preferred_element_type=jnp.float32) + kbias
        m = jnp.max(s, axis=-1, keepdims=True)
        e = jnp.exp(s - m)
        inv_den = 1.0 / jnp.sum(e, axis=-1, keepdims=True)   # exact softmax
        p = (e * inv_den).astype(jnp.bfloat16)
        oh = jnp.einsum('blm,bmd->bld', p, vh,
                        preferred_element_type=jnp.float32)
        attn_buf[:, h * d_v:(h + 1) * d_v] = oh.reshape(BB * L, d_v)

    # ---- ONE (BB*L, H*d_v) @ (H*d_v, D) output projection + residual ------
    o = jnp.dot(attn_buf[...].astype(jnp.bfloat16), wfcT_ref[...],
                preferred_element_type=jnp.float32) + seg('bfc', D) + x2

    # ---- LayerNorm 1 (one-pass moments, f32) + non_pad_mask ---------------
    mu = jnp.mean(o, axis=-1, keepdims=True)
    var = jnp.maximum(jnp.mean(o * o, axis=-1, keepdims=True) - mu * mu, 0.0)
    a = ((o - mu) * jax.lax.rsqrt(var + eps) * seg('g1', D) + seg('be1', D)) * npm

    # ---- Position-wise FFN, tiled over d_inner (Conv1d k=1 == pointwise) --
    a_bf = a.astype(jnp.bfloat16)
    f = a + seg('b2', D)                              # residual + w2 bias
    for c0 in range(0, d_inner, ffn_chunk):
        c1 = min(c0 + ffn_chunk, d_inner)
        h1 = jnp.dot(a_bf, w1T_ref[:, c0:c1],
                     preferred_element_type=jnp.float32) + seg('b1', c1 - c0, c0)
        h1 = jnp.maximum(h1, 0.0).astype(jnp.bfloat16)
        f = f + jnp.dot(h1, w2T_ref[c0:c1, :],
                        preferred_element_type=jnp.float32)

    # ---- LayerNorm 2 (one-pass moments, f32) + non_pad_mask ---------------
    mu2 = jnp.mean(f, axis=-1, keepdims=True)
    var2 = jnp.maximum(jnp.mean(f * f, axis=-1, keepdims=True) - mu2 * mu2, 0.0)
    f = ((f - mu2) * jax.lax.rsqrt(var2 + eps) * seg('g2', D) + seg('be2', D)) * npm

    out_ref[...] = f.reshape(BB, L, D)


# ---------------------------------------------------------------------------
# Wrapper
# ---------------------------------------------------------------------------
def _vmem_limit_bytes():
    """Per-generation scoped-VMEM limit (v7x has only 64 MiB physical)."""
    try:
        kind = jax.devices()[0].device_kind.lower()
    except Exception:
        return 64 * 1024 * 1024
    if 'v7' in kind:
        return 48 * 1024 * 1024
    if 'v5' in kind or 'v6' in kind:
        return 96 * 1024 * 1024
    return 64 * 1024 * 1024


def _pick_batch_block(B, L, D, budget_bytes=8 << 20):
    """Largest divisor of B that (a) keeps the per-block activation footprint
    modest and (b) leaves >=2 grid blocks so v7x's second TensorCore has work;
    prefers MXU-friendly row counts (BB*L multiple of 256)."""
    divisors = [d for d in range(1, B + 1) if B % d == 0]
    fitting = [d for d in divisors
               if d * L * (10 * D + 3 * L) * 4 <= budget_bytes] or [1]
    multi = [d for d in fitting if B // d >= 2] or fitting
    aligned = [d for d in multi if (d * L) % 256 == 0] or multi
    return max(aligned)


def encoder_stack(x, npm_flat, kbias, stacked, seg_off, *, n_head, d_k, d_v,
                  batch_block=None, ffn_chunk=512):
    B, L, D = x.shape
    n_layers = stacked['wqkvT'].shape[0]
    d_inner = stacked['w1T'].shape[-1]
    Hv = n_head * d_v

    BB = batch_block if batch_block is not None else _pick_batch_block(B, L, D)
    assert B % BB == 0, "batch must be divisible by batch_block"
    chunk = min(ffn_chunk, d_inner)

    weights = [stacked[n] for n in _BIG_WEIGHT_NAMES] + [stacked['small']]
    # Weights stacked per layer; layer axis squeezed in the kernel and indexed
    # by the inner grid axis so layer l+1 DMAs overlap layer l compute.
    w_specs = [pl.BlockSpec((None,) + w.shape[1:], lambda b, l: (l, 0, 0))
               for w in weights]

    kern = functools.partial(
        encoder_stack_kernel,
        n_head=n_head, d_k=d_k, d_v=d_v,
        seg_off=seg_off, ffn_chunk=chunk)

    return pl.pallas_call(
        kern,
        out_shape=jax.ShapeDtypeStruct((B, L, D), jnp.float32),
        grid_spec=pltpu.PrefetchScalarGridSpec(
            num_scalar_prefetch=0,
            grid=(B // BB, n_layers),
            in_specs=[pl.BlockSpec((BB, L, D), lambda b, l: (b, 0, 0)),
                      pl.BlockSpec((BB * L, 1), lambda b, l: (b, 0)),
                      pl.BlockSpec((BB, 1, L), lambda b, l: (b, 0, 0))] + w_specs,
            out_specs=pl.BlockSpec((BB, L, D), lambda b, l: (b, 0, 0)),
            scratch_shapes=[pltpu.VMEM((BB * L, Hv), jnp.float32)],
        ),
        compiler_params=pltpu.CompilerParams(
            dimension_semantics=("parallel", "arbitrary"),
            vmem_limit_bytes=_vmem_limit_bytes()),
    )(x, npm_flat, kbias, *weights)


# ---------------------------------------------------------------------------
# Parameters (matching the PyTorch module's init)
# ---------------------------------------------------------------------------
def positional_encoding(max_len, d_model):
    position = jnp.arange(max_len, dtype=jnp.float32)[:, None]
    div_term = jnp.exp(jnp.arange(0, d_model, 2, dtype=jnp.float32)
                       * -(math.log(10000.0) / d_model))
    pe = jnp.zeros((max_len, d_model), dtype=jnp.float32)
    pe = pe.at[:, 0::2].set(jnp.sin(position * div_term))
    pe = pe.at[:, 1::2].set(jnp.cos(position * div_term))
    return pe


def _pack_small_params(parts, lane=128):
    """Concatenate (1, w) vectors along lanes, padding each start to 128."""
    offs, cols, cur = {}, [], 0
    for name, arr in parts:
        w = arr.shape[-1]
        offs[name] = cur
        pad = (-w) % lane
        if pad:
            arr = jnp.pad(arr, ((0, 0), (0, pad)))
        cols.append(arr)
        cur += w + pad
    return jnp.concatenate(cols, axis=-1), offs


def init_params(key, vocab_size, d_model, n_head, n_layers, max_len=512):
    d_k = d_v = d_model // n_head
    d_inner = d_model * 4
    inv_temp = 1.0 / math.sqrt(float(d_k))
    keys = jax.random.split(key, 1 + n_layers)

    emb = 0.1 * jax.random.normal(keys[0], (vocab_size, d_model), jnp.float32)
    emb = emb.at[PAD].set(0.0)                 # padding_idx row is zero
    pe = positional_encoding(max_len, d_model)

    big, small, seg_off = {n: [] for n in _BIG_WEIGHT_NAMES}, [], None
    for li in range(n_layers):
        k = jax.random.split(keys[1 + li], 12)
        std_qk = math.sqrt(2.0 / (d_model + d_k))
        std_v = math.sqrt(2.0 / (d_model + d_v))
        std_fc = math.sqrt(2.0 / (n_head * d_v + d_model))

        wq = std_qk * jax.random.normal(k[0], (n_head * d_k, d_model), jnp.float32)
        wk = std_qk * jax.random.normal(k[1], (n_head * d_k, d_model), jnp.float32)
        wv = std_v * jax.random.normal(k[2], (n_head * d_v, d_model), jnp.float32)
        bq = 0.02 * jax.random.normal(k[3], (1, n_head * d_k), jnp.float32)
        bk = 0.02 * jax.random.normal(k[4], (1, n_head * d_k), jnp.float32)
        bv = 0.02 * jax.random.normal(k[5], (1, n_head * d_v), jnp.float32)
        wfc = std_fc * jax.random.normal(k[6], (d_model, n_head * d_v), jnp.float32)
        bfc = 0.02 * jax.random.normal(k[7], (1, d_model), jnp.float32)
        w1 = 0.05 * jax.random.normal(k[8], (d_inner, d_model), jnp.float32)
        b1 = 0.02 * jax.random.normal(k[9], (1, d_inner), jnp.float32)
        w2 = 0.05 * jax.random.normal(k[10], (d_model, d_inner), jnp.float32)
        b2 = 0.02 * jax.random.normal(k[11], (1, d_model), jnp.float32)

        # Fold the 1/sqrt(d_k) softmax temperature into the Q projection.
        wq = wq * inv_temp
        bq = bq * inv_temp

        big['wqkvT'].append(
            jnp.concatenate([wq.T, wk.T, wv.T], axis=1).astype(jnp.bfloat16))
        big['wfcT'].append(wfc.T.astype(jnp.bfloat16))
        big['w1T'].append(w1.T.astype(jnp.bfloat16))
        big['w2T'].append(w2.T.astype(jnp.bfloat16))

        parts = [('bqkv', jnp.concatenate([bq, bk, bv], axis=1)),
                 ('bfc', bfc),
                 ('g1', jnp.ones((1, d_model), jnp.float32)),
                 ('be1', jnp.zeros((1, d_model), jnp.float32)),
                 ('b1', b1),
                 ('b2', b2),
                 ('g2', jnp.ones((1, d_model), jnp.float32)),
                 ('be2', jnp.zeros((1, d_model), jnp.float32))]
        packed, seg_off = _pack_small_params(parts)
        small.append(packed[None, :, :])      # (1, 1, total)

    stacked = {n: jnp.stack(big[n], axis=0) for n in _BIG_WEIGHT_NAMES}
    stacked['small'] = jnp.concatenate(small, axis=0)   # (n_layers, 1, total)
    return dict(emb=emb, pe=pe, stacked=stacked, seg_off=seg_off,
                n_head=n_head, d_k=d_k, d_v=d_v)


# ---------------------------------------------------------------------------
# Forward (embedding + masks on the JAX side, layer stack in Pallas)
# ---------------------------------------------------------------------------
def encoder_forward(src_seq, params, batch_block=None):
    B, L = src_seq.shape
    non_pad = (src_seq != PAD).astype(jnp.float32)[:, :, None]        # (B, L, 1)
    npm_flat = non_pad.reshape(B * L, 1)                              # (B*L, 1)
    # additive key-pad bias: -1e9 where key is PAD (avoids -inf NaN hazard)
    kbias = jnp.float32(-1e9) * (src_seq == PAD).astype(jnp.float32)[:, None, :]

    x = params['emb'][src_seq] + params['pe'][:L][None, :, :]         # (B, L, D)

    return encoder_stack(x, npm_flat, kbias, params['stacked'],
                         params['seg_off'],
                         n_head=params['n_head'],
                         d_k=params['d_k'], d_v=params['d_v'],
                         batch_block=batch_block)


if __name__ == "__main__":
    vocab_size = 20
    d_model = 32
    n_head = 4
    n_layers = 2
    B, L = 2, 8

    key = jax.random.PRNGKey(0)
    pkey, skey = jax.random.split(key)

    params = init_params(pkey, vocab_size, d_model, n_head, n_layers)

    # token ids in [1, vocab) with trailing PAD tokens
    src_seq = jax.random.randint(skey, (B, L), 1, vocab_size, dtype=jnp.int32)
    src_seq = src_seq.at[:, -2:].set(PAD)

    out = encoder_forward(src_seq, params)
    jax.block_until_ready(out)
    assert out.shape == (B, L, d_model)
    assert bool(jnp.all(jnp.isfinite(out)))
    print("KERNEL_OK")
</pallas_src>

<mosaic_0001>
module attributes {stable_mosaic.version = 11 : i64} {
  func.func @encoder_stack_kernel(%arg0: i32, %arg1: i32, %arg2: memref<1x8x32xf32, #tpu.memory_space<vmem>>, %arg3: memref<8x1xf32, #tpu.memory_space<vmem>>, %arg4: memref<1x1x8xf32, #tpu.memory_space<vmem>>, %arg5: memref<1x32x96xbf16, #tpu.memory_space<vmem>>, %arg6: memref<1x32x32xbf16, #tpu.memory_space<vmem>>, %arg7: memref<1x32x128xbf16, #tpu.memory_space<vmem>>, %arg8: memref<1x128x32xbf16, #tpu.memory_space<vmem>>, %arg9: memref<1x1x1024xf32, #tpu.memory_space<vmem>>, %arg10: memref<1x8x32xf32, #tpu.memory_space<vmem>>, %arg11: memref<8x32xf32, #tpu.memory_space<vmem>>) attributes {dimension_semantics = [#tpu.dimension_semantics<parallel>, #tpu.dimension_semantics<arbitrary>], iteration_bounds = array<i64: 2, 2>, scalar_prefetch = 0 : i64, scratch_operands = 1 : i64, tpu.core_type = #tpu.core_type<tc>, window_params = [{transform_indices = @transform_0, window_bounds = array<i64: 1, 8, 32>}, {transform_indices = @transform_1, window_bounds = array<i64: 8, 1>}, {transform_indices = @transform_2, window_bounds = array<i64: 1, 1, 8>}, {transform_indices = @transform_3, window_bounds = array<i64: 1, 32, 96>}, {transform_indices = @transform_4, window_bounds = array<i64: 1, 32, 32>}, {transform_indices = @transform_5, window_bounds = array<i64: 1, 32, 128>}, {transform_indices = @transform_6, window_bounds = array<i64: 1, 128, 32>}, {transform_indices = @transform_7, window_bounds = array<i64: 1, 1, 1024>}, {transform_indices = @transform_8, window_bounds = array<i64: 1, 8, 32>}]} {
    %c0_i32 = arith.constant 0 : i32
    %0 = arith.cmpi eq, %arg1, %c0_i32 : i32
    %1 = arith.extui %0 : i1 to i32
    %c0_i32_0 = arith.constant 0 : i32
    %2 = arith.cmpi ne, %1, %c0_i32_0 : i32
    scf.if %2 {
      %c0_83 = arith.constant 0 : index
      %c0_84 = arith.constant 0 : index
      %c0_85 = arith.constant 0 : index
      %203 = vector.load %arg2[%c0_83, %c0_84, %c0_85] : memref<1x8x32xf32, #tpu.memory_space<vmem>>, vector<1x8x32xf32>
      %c0_86 = arith.constant 0 : index
      %c0_87 = arith.constant 0 : index
      %c0_88 = arith.constant 0 : index
      %204 = vector.load %arg10[%c0_86, %c0_87, %c0_88] : memref<1x8x32xf32, #tpu.memory_space<vmem>>, vector<1x8x32xf32>
      tpu.vector_store %arg10[%c0_86, %c0_87, %c0_88], %203 {strides = array<i32>} : memref<1x8x32xf32, #tpu.memory_space<vmem>>, vector<1x8x32xf32>,
    } else {
    }
    %c0 = arith.constant 0 : index
    %c0_1 = arith.constant 0 : index
    %c0_2 = arith.constant 0 : index
    %3 = vector.load %arg10[%c0, %c0_1, %c0_2] : memref<1x8x32xf32, #tpu.memory_space<vmem>>, vector<1x8x32xf32>
    %c0_3 = arith.constant 0 : index
    %c0_4 = arith.constant 0 : index
    %4 = vector.load %arg3[%c0_3, %c0_4] : memref<8x1xf32, #tpu.memory_space<vmem>>, vector<8x1xf32>
    %c0_5 = arith.constant 0 : index
    %c0_6 = arith.constant 0 : index
    %c0_7 = arith.constant 0 : index
    %5 = vector.load %arg4[%c0_5, %c0_6, %c0_7] : memref<1x1x8xf32, #tpu.memory_space<vmem>>, vector<1x1x8xf32>
    %6 = vector.shape_cast %3 : vector<1x8x32xf32> to vector<8x32xf32>
    %7 = arith.truncf %6 : vector<8x32xf32> to vector<8x32xbf16>
    %c0_8 = arith.constant 0 : index
    %c0_9 = arith.constant 0 : index
    %c0_10 = arith.constant 0 : index
    %8 = vector.load %arg5[%c0_8, %c0_9, %c0_10] : memref<1x32x96xbf16, #tpu.memory_space<vmem>>, vector<1x32x96xbf16>
    %9 = vector.shape_cast %8 : vector<1x32x96xbf16> to vector<32x96xbf16>
    %cst = arith.constant dense<0.000000e+00> : vector<8x96xf32>
    %10 = tpu.matmul %7, %9, %cst {dimension_numbers = #tpu.dot_dimension_numbers<[1], [0], [0], [1], [0, 0, 1, 1], [], []>} : vector<8x32xbf16>, vector<32x96xbf16>, vector<8x96xf32> -> vector<8x96xf32>
    %c0_11 = arith.constant 0 : index
    %c0_12 = arith.constant 0 : index
    %c0_13 = arith.constant 0 : index
    %11 = vector.load %arg9[%c0_11, %c0_12, %c0_13] : memref<1x1x1024xf32, #tpu.memory_space<vmem>>, vector<1x1x96xf32>
    %12 = vector.shape_cast %11 : vector<1x1x96xf32> to vector<1x96xf32>
    %13 = vector.broadcast %12 : vector<1x96xf32> to vector<8x96xf32>
    %14 = arith.addf %10, %13 : vector<8x96xf32>
    %15 = vector.shape_cast %14 : vector<8x96xf32> to vector<1x8x96xf32>
    %16 = vector.extract_strided_slice %15 {offsets = [0, 0, 0], sizes = [1, 8, 8], strides = [1, 1, 1]} : vector<1x8x96xf32> to vector<1x8x8xf32>
    %17 = arith.truncf %16 : vector<1x8x8xf32> to vector<1x8x8xbf16>
    %18 = vector.extract_strided_slice %15 {offsets = [0, 0, 32], sizes = [1, 8, 8], strides = [1, 1, 1]} : vector<1x8x96xf32> to vector<1x8x8xf32>
    %19 = arith.truncf %18 : vector<1x8x8xf32> to vector<1x8x8xbf16>
    %20 = vector.extract_strided_slice %15 {offsets = [0, 0, 64], sizes = [1, 8, 8], strides = [1, 1, 1]} : vector<1x8x96xf32> to vector<1x8x8xf32>
    %21 = arith.truncf %20 : vector<1x8x8xf32> to vector<1x8x8xbf16>
    "tpu.trace_start"() <{level = 10 : i32, message = "bld,bmd->blm"}> : () -> ()
    %cst_14 = arith.constant dense<0.000000e+00> : vector<1x8x8xf32>
    %22 = tpu.matmul %17, %19, %cst_14 {dimension_numbers = #tpu.dot_dimension_numbers<[2], [2], [1], [1], [0, 0, 0, 1, 1, 1], [0], [0]>} : vector<1x8x8xbf16>, vector<1x8x8xbf16>, vector<1x8x8xf32> -> vector<1x8x8xf32>
    "tpu.trace_stop"() : () -> ()
    %23 = vector.broadcast %5 : vector<1x1x8xf32> to vector<1x8x8xf32>
    %24 = arith.addf %22, %23 : vector<1x8x8xf32>
    %cst_15 = arith.constant dense<0xFF800000> : vector<1x8xf32>
    %25 = vector.multi_reduction <maximumf>, %24, %cst_15 [2] : vector<1x8x8xf32> to vector<1x8xf32>
    %26 = vector.shape_cast %25 : vector<1x8xf32> to vector<1x8x1xf32>
    %27 = vector.broadcast %26 : vector<1x8x1xf32> to vector<1x8x8xf32>
    %28 = arith.subf %24, %27 : vector<1x8x8xf32>
    %29 = math.exp %28 : vector<1x8x8xf32>
    %cst_16 = arith.constant dense<0.000000e+00> : vector<1x8xf32>
    %30 = vector.multi_reduction <add>, %29, %cst_16 [2] : vector<1x8x8xf32> to vector<1x8xf32>
    %31 = vector.shape_cast %30 : vector<1x8xf32> to vector<1x8x1xf32>
    %cst_17 = arith.constant 1.000000e+00 : f32
    %32 = vector.broadcast %cst_17 : f32 to vector<1x8x1xf32>
    %33 = arith.divf %32, %31 : vector<1x8x1xf32>
    %34 = vector.broadcast %33 : vector<1x8x1xf32> to vector<1x8x8xf32>
    %35 = arith.mulf %29, %34 : vector<1x8x8xf32>
    %36 = arith.truncf %35 : vector<1x8x8xf32> to vector<1x8x8xbf16>
    "tpu.trace_start"() <{level = 10 : i32, message = "blm,bmd->bld"}> : () -> ()
    %cst_18 = arith.constant dense<0.000000e+00> : vector<1x8x8xf32>
    %37 = tpu.matmul %36, %21, %cst_18 {dimension_numbers = #tpu.dot_dimension_numbers<[2], [1], [1], [2], [0, 0, 0, 1, 1, 2], [0], [0]>} : vector<1x8x8xbf16>, vector<1x8x8xbf16>, vector<1x8x8xf32> -> vector<1x8x8xf32>
    "tpu.trace_stop"() : () -> ()
    %38 = vector.shape_cast %37 : vector<1x8x8xf32> to vector<8x8xf32>
    %c0_19 = arith.constant 0 : index
    %c0_20 = arith.constant 0 : index
    %39 = vector.load %arg11[%c0_19, %c0_20] : memref<8x32xf32, #tpu.memory_space<vmem>>, vector<8x8xf32>
    tpu.vector_store %arg11[%c0_19, %c0_20], %38 {strides = array<i32>} : memref<8x32xf32, #tpu.memory_space<vmem>>, vector<8x8xf32>,
    %40 = vector.extract_strided_slice %15 {offsets = [0, 0, 8], sizes = [1, 8, 8], strides = [1, 1, 1]} : vector<1x8x96xf32> to vector<1x8x8xf32>
    %41 = arith.truncf %40 : vector<1x8x8xf32> to vector<1x8x8xbf16>
    %42 = vector.extract_strided_slice %15 {offsets = [0, 0, 40], sizes = [1, 8, 8], strides = [1, 1, 1]} : vector<1x8x96xf32> to vector<1x8x8xf32>
    %43 = arith.truncf %42 : vector<1x8x8xf32> to vector<1x8x8xbf16>
    %44 = vector.extract_strided_slice %15 {offsets = [0, 0, 72], sizes = [1, 8, 8], strides = [1, 1, 1]} : vector<1x8x96xf32> to vector<1x8x8xf32>
    %45 = arith.truncf %44 : vector<1x8x8xf32> to vector<1x8x8xbf16>
    "tpu.trace_start"() <{level = 10 : i32, message = "bld,bmd->blm"}> : () -> ()
    %cst_21 = arith.constant dense<0.000000e+00> : vector<1x8x8xf32>
    %46 = tpu.matmul %41, %43, %cst_21 {dimension_numbers = #tpu.dot_dimension_numbers<[2], [2], [1], [1], [0, 0, 0, 1, 1, 1], [0], [0]>} : vector<1x8x8xbf16>, vector<1x8x8xbf16>, vector<1x8x8xf32> -> vector<1x8x8xf32>
    "tpu.trace_stop"() : () -> ()
    %47 = vector.broadcast %5 : vector<1x1x8xf32> to vector<1x8x8xf32>
    %48 = arith.addf %46, %47 : vector<1x8x8xf32>
    %cst_22 = arith.constant dense<0xFF800000> : vector<1x8xf32>
    %49 = vector.multi_reduction <maximumf>, %48, %cst_22 [2] : vector<1x8x8xf32> to vector<1x8xf32>
    %50 = vector.shape_cast %49 : vector<1x8xf32> to vector<1x8x1xf32>
    %51 = vector.broadcast %50 : vector<1x8x1xf32> to vector<1x8x8xf32>
    %52 = arith.subf %48, %51 : vector<1x8x8xf32>
    %53 = math.exp %52 : vector<1x8x8xf32>
    %cst_23 = arith.constant dense<0.000000e+00> : vector<1x8xf32>
    %54 = vector.multi_reduction <add>, %53, %cst_23 [2] : vector<1x8x8xf32> to vector<1x8xf32>
    %55 = vector.shape_cast %54 : vector<1x8xf32> to vector<1x8x1xf32>
    %cst_24 = arith.constant 1.000000e+00 : f32
    %56 = vector.broadcast %cst_24 : f32 to vector<1x8x1xf32>
    %57 = arith.divf %56, %55 : vector<1x8x1xf32>
    %58 = vector.broadcast %57 : vector<1x8x1xf32> to vector<1x8x8xf32>
    %59 = arith.mulf %53, %58 : vector<1x8x8xf32>
    %60 = arith.truncf %59 : vector<1x8x8xf32> to vector<1x8x8xbf16>
    "tpu.trace_start"() <{level = 10 : i32, message = "blm,bmd->bld"}> : () -> ()
    %cst_25 = arith.constant dense<0.000000e+00> : vector<1x8x8xf32>
    %61 = tpu.matmul %60, %45, %cst_25 {dimension_numbers = #tpu.dot_dimension_numbers<[2], [1], [1], [2], [0, 0, 0, 1, 1, 2], [0], [0]>} : vector<1x8x8xbf16>, vector<1x8x8xbf16>, vector<1x8x8xf32> -> vector<1x8x8xf32>
    "tpu.trace_stop"() : () -> ()
    %62 = vector.shape_cast %61 : vector<1x8x8xf32> to vector<8x8xf32>
    %c0_26 = arith.constant 0 : index
    %c8 = arith.constant 8 : index
    %63 = vector.load %arg11[%c0_26, %c8] : memref<8x32xf32, #tpu.memory_space<vmem>>, vector<8x8xf32>
    tpu.vector_store %arg11[%c0_26, %c8], %62 {strides = array<i32>} : memref<8x32xf32, #tpu.memory_space<vmem>>, vector<8x8xf32>,
    %64 = vector.extract_strided_slice %15 {offsets = [0, 0, 16], sizes = [1, 8, 8], strides = [1, 1, 1]} : vector<1x8x96xf32> to vector<1x8x8xf32>
    %65 = arith.truncf %64 : vector<1x8x8xf32> to vector<1x8x8xbf16>
    %66 = vector.extract_strided_slice %15 {offsets = [0, 0, 48], sizes = [1, 8, 8], strides = [1, 1, 1]} : vector<1x8x96xf32> to vector<1x8x8xf32>
    %67 = arith.truncf %66 : vector<1x8x8xf32> to vector<1x8x8xbf16>
    %68 = vector.extract_strided_slice %15 {offsets = [0, 0, 80], sizes = [1, 8, 8], strides = [1, 1, 1]} : vector<1x8x96xf32> to vector<1x8x8xf32>
    %69 = arith.truncf %68 : vector<1x8x8xf32> to vector<1x8x8xbf16>
    "tpu.trace_start"() <{level = 10 : i32, message = "bld,bmd->blm"}> : () -> ()
    %cst_27 = arith.constant dense<0.000000e+00> : vector<1x8x8xf32>
    %70 = tpu.matmul %65, %67, %cst_27 {dimension_numbers = #tpu.dot_dimension_numbers<[2], [2], [1], [1], [0, 0, 0, 1, 1, 1], [0], [0]>} : vector<1x8x8xbf16>, vector<1x8x8xbf16>, vector<1x8x8xf32> -> vector<1x8x8xf32>
    "tpu.trace_stop"() : () -> ()
    %71 = vector.broadcast %5 : vector<1x1x8xf32> to vector<1x8x8xf32>
    %72 = arith.addf %70, %71 : vector<1x8x8xf32>
    %cst_28 = arith.constant dense<0xFF800000> : vector<1x8xf32>
    %73 = vector.multi_reduction <maximumf>, %72, %cst_28 [2] : vector<1x8x8xf32> to vector<1x8xf32>
    %74 = vector.shape_cast %73 : vector<1x8xf32> to vector<1x8x1xf32>
    %75 = vector.broadcast %74 : vector<1x8x1xf32> to vector<1x8x8xf32>
    %76 = arith.subf %72, %75 : vector<1x8x8xf32>
    %77 = math.exp %76 : vector<1x8x8xf32>
    %cst_29 = arith.constant dense<0.000000e+00> : vector<1x8xf32>
    %78 = vector.multi_reduction <add>, %77, %cst_29 [2] : vector<1x8x8xf32> to vector<1x8xf32>
    %79 = vector.shape_cast %78 : vector<1x8xf32> to vector<1x8x1xf32>
    %cst_30 = arith.constant 1.000000e+00 : f32
    %80 = vector.broadcast %cst_30 : f32 to vector<1x8x1xf32>
    %81 = arith.divf %80, %79 : vector<1x8x1xf32>
    %82 = vector.broadcast %81 : vector<1x8x1xf32> to vector<1x8x8xf32>
    %83 = arith.mulf %77, %82 : vector<1x8x8xf32>
    %84 = arith.truncf %83 : vector<1x8x8xf32> to vector<1x8x8xbf16>
    "tpu.trace_start"() <{level = 10 : i32, message = "blm,bmd->bld"}> : () -> ()
    %cst_31 = arith.constant dense<0.000000e+00> : vector<1x8x8xf32>
    %85 = tpu.matmul %84, %69, %cst_31 {dimension_numbers = #tpu.dot_dimension_numbers<[2], [1], [1], [2], [0, 0, 0, 1, 1, 2], [0], [0]>} : vector<1x8x8xbf16>, vector<1x8x8xbf16>, vector<1x8x8xf32> -> vector<1x8x8xf32>
    "tpu.trace_stop"() : () -> ()
    %86 = vector.shape_cast %85 : vector<1x8x8xf32> to vector<8x8xf32>
    %c0_32 = arith.constant 0 : index
    %c16 = arith.constant 16 : index
    %87 = vector.load %arg11[%c0_32, %c16] : memref<8x32xf32, #tpu.memory_space<vmem>>, vector<8x8xf32>
    tpu.vector_store %arg11[%c0_32, %c16], %86 {strides = array<i32>} : memref<8x32xf32, #tpu.memory_space<vmem>>, vector<8x8xf32>,
    %88 = vector.extract_strided_slice %15 {offsets = [0, 0, 24], sizes = [1, 8, 8], strides = [1, 1, 1]} : vector<1x8x96xf32> to vector<1x8x8xf32>
    %89 = arith.truncf %88 : vector<1x8x8xf32> to vector<1x8x8xbf16>
    %90 = vector.extract_strided_slice %15 {offsets = [0, 0, 56], sizes = [1, 8, 8], strides = [1, 1, 1]} : vector<1x8x96xf32> to vector<1x8x8xf32>
    %91 = arith.truncf %90 : vector<1x8x8xf32> to vector<1x8x8xbf16>
    %92 = vector.extract_strided_slice %15 {offsets = [0, 0, 88], sizes = [1, 8, 8], strides = [1, 1, 1]} : vector<1x8x96xf32> to vector<1x8x8xf32>
    %93 = arith.truncf %92 : vector<1x8x8xf32> to vector<1x8x8xbf16>
    "tpu.trace_start"() <{level = 10 : i32, message = "bld,bmd->blm"}> : () -> ()
    %cst_33 = arith.constant dense<0.000000e+00> : vector<1x8x8xf32>
    %94 = tpu.matmul %89, %91, %cst_33 {dimension_numbers = #tpu.dot_dimension_numbers<[2], [2], [1], [1], [0, 0, 0, 1, 1, 1], [0], [0]>} : vector<1x8x8xbf16>, vector<1x8x8xbf16>, vector<1x8x8xf32> -> vector<1x8x8xf32>
    "tpu.trace_stop"() : () -> ()
    %95 = vector.broadcast %5 : vector<1x1x8xf32> to vector<1x8x8xf32>
    %96 = arith.addf %94, %95 : vector<1x8x8xf32>
    %cst_34 = arith.constant dense<0xFF800000> : vector<1x8xf32>
    %97 = vector.multi_reduction <maximumf>, %96, %cst_34 [2] : vector<1x8x8xf32> to vector<1x8xf32>
    %98 = vector.shape_cast %97 : vector<1x8xf32> to vector<1x8x1xf32>
    %99 = vector.broadcast %98 : vector<1x8x1xf32> to vector<1x8x8xf32>
    %100 = arith.subf %96, %99 : vector<1x8x8xf32>
    %101 = math.exp %100 : vector<1x8x8xf32>
    %cst_35 = arith.constant dense<0.000000e+00> : vector<1x8xf32>
    %102 = vector.multi_reduction <add>, %101, %cst_35 [2] : vector<1x8x8xf32> to vector<1x8xf32>
    %103 = vector.shape_cast %102 : vector<1x8xf32> to vector<1x8x1xf32>
    %cst_36 = arith.constant 1.000000e+00 : f32
    %104 = vector.broadcast %cst_36 : f32 to vector<1x8x1xf32>
    %105 = arith.divf %104, %103 : vector<1x8x1xf32>
    %106 = vector.broadcast %105 : vector<1x8x1xf32> to vector<1x8x8xf32>
    %107 = arith.mulf %101, %106 : vector<1x8x8xf32>
    %108 = arith.truncf %107 : vector<1x8x8xf32> to vector<1x8x8xbf16>
    "tpu.trace_start"() <{level = 10 : i32, message = "blm,bmd->bld"}> : () -> ()
    %cst_37 = arith.constant dense<0.000000e+00> : vector<1x8x8xf32>
    %109 = tpu.matmul %108, %93, %cst_37 {dimension_numbers = #tpu.dot_dimension_numbers<[2], [1], [1], [2], [0, 0, 0, 1, 1, 2], [0], [0]>} : vector<1x8x8xbf16>, vector<1x8x8xbf16>, vector<1x8x8xf32> -> vector<1x8x8xf32>
    "tpu.trace_stop"() : () -> ()
    %110 = vector.shape_cast %109 : vector<1x8x8xf32> to vector<8x8xf32>
    %c0_38 = arith.constant 0 : index
    %c24 = arith.constant 24 : index
    %111 = vector.load %arg11[%c0_38, %c24] : memref<8x32xf32, #tpu.memory_space<vmem>>, vector<8x8xf32>
    tpu.vector_store %arg11[%c0_38, %c24], %110 {strides = array<i32>} : memref<8x32xf32, #tpu.memory_space<vmem>>, vector<8x8xf32>,
    %c0_39 = arith.constant 0 : index
    %c0_40 = arith.constant 0 : index
    %112 = vector.load %arg11[%c0_39, %c0_40] : memref<8x32xf32, #tpu.memory_space<vmem>>, vector<8x32xf32>
    %113 = arith.truncf %112 : vector<8x32xf32> to vector<8x32xbf16>
    %c0_41 = arith.constant 0 : index
    %c0_42 = arith.constant 0 : index
    %c0_43 = arith.constant 0 : index
    %114 = vector.load %arg6[%c0_41, %c0_42, %c0_43] : memref<1x32x32xbf16, #tpu.memory_space<vmem>>, vector<1x32x32xbf16>
    %115 = vector.shape_cast %114 : vector<1x32x32xbf16> to vector<32x32xbf16>
    %cst_44 = arith.constant dense<0.000000e+00> : vector<8x32xf32>
    %116 = tpu.matmul %113, %115, %cst_44 {dimension_numbers = #tpu.dot_dimension_numbers<[1], [0], [0], [1], [0, 0, 1, 1], [], []>} : vector<8x32xbf16>, vector<32x32xbf16>, vector<8x32xf32> -> vector<8x32xf32>
    %c0_45 = arith.constant 0 : index
    %c0_46 = arith.constant 0 : index
    %c128 = arith.constant 128 : index
    %117 = vector.load %arg9[%c0_45, %c0_46, %c128] : memref<1x1x1024xf32, #tpu.memory_space<vmem>>, vector<1x1x32xf32>
    %118 = vector.shape_cast %117 : vector<1x1x32xf32> to vector<1x32xf32>
    %119 = vector.broadcast %118 : vector<1x32xf32> to vector<8x32xf32>
    %120 = arith.addf %116, %119 : vector<8x32xf32>
    %121 = arith.addf %120, %6 : vector<8x32xf32>
    %cst_47 = arith.constant dense<0.000000e+00> : vector<8xf32>
    %122 = vector.multi_reduction <add>, %121, %cst_47 [1] : vector<8x32xf32> to vector<8xf32>
    %123 = vector.shape_cast %122 : vector<8xf32> to vector<8x1xf32>
    %cst_48 = arith.constant 3.200000e+01 : f32
    %124 = vector.broadcast %cst_48 : f32 to vector<8x1xf32>
    %125 = arith.divf %123, %124 : vector<8x1xf32>
    %126 = arith.mulf %121, %121 : vector<8x32xf32>
    %cst_49 = arith.constant dense<0.000000e+00> : vector<8xf32>
    %127 = vector.multi_reduction <add>, %126, %cst_49 [1] : vector<8x32xf32> to vector<8xf32>
    %128 = vector.shape_cast %127 : vector<8xf32> to vector<8x1xf32>
    %cst_50 = arith.constant 3.200000e+01 : f32
    %129 = vector.broadcast %cst_50 : f32 to vector<8x1xf32>
    %130 = arith.divf %128, %129 : vector<8x1xf32>
    %131 = arith.mulf %125, %125 : vector<8x1xf32>
    %132 = arith.subf %130, %131 : vector<8x1xf32>
    %cst_51 = arith.constant 0.000000e+00 : f32
    %133 = vector.broadcast %cst_51 : f32 to vector<8x1xf32>
    %134 = arith.maximumf %132, %133 : vector<8x1xf32>
    %135 = vector.broadcast %125 : vector<8x1xf32> to vector<8x32xf32>
    %136 = arith.subf %121, %135 : vector<8x32xf32>
    %cst_52 = arith.constant 9.99999974E-6 : f32
    %137 = vector.broadcast %cst_52 : f32 to vector<8x1xf32>
    %138 = arith.addf %134, %137 : vector<8x1xf32>
    %139 = math.rsqrt %138 : vector<8x1xf32>
    %140 = vector.broadcast %139 : vector<8x1xf32> to vector<8x32xf32>
    %141 = arith.mulf %136, %140 : vector<8x32xf32>
    %c0_53 = arith.constant 0 : index
    %c0_54 = arith.constant 0 : index
    %c256 = arith.constant 256 : index
    %142 = vector.load %arg9[%c0_53, %c0_54, %c256] : memref<1x1x1024xf32, #tpu.memory_space<vmem>>, vector<1x1x32xf32>
    %143 = vector.shape_cast %142 : vector<1x1x32xf32> to vector<1x32xf32>
    %144 = vector.broadcast %143 : vector<1x32xf32> to vector<8x32xf32>
    %145 = arith.mulf %141, %144 : vector<8x32xf32>
    %c0_55 = arith.constant 0 : index
    %c0_56 = arith.constant 0 : index
    %c384 = arith.constant 384 : index
    %146 = vector.load %arg9[%c0_55, %c0_56, %c384] : memref<1x1x1024xf32, #tpu.memory_space<vmem>>, vector<1x1x32xf32>
    %147 = vector.shape_cast %146 : vector<1x1x32xf32> to vector<1x32xf32>
    %148 = vector.broadcast %147 : vector<1x32xf32> to vector<8x32xf32>
    %149 = arith.addf %145, %148 : vector<8x32xf32>
    %150 = vector.broadcast %4 : vector<8x1xf32> to vector<8x32xf32>
    %151 = arith.mulf %149, %150 : vector<8x32xf32>
    %152 = arith.truncf %151 : vector<8x32xf32> to vector<8x32xbf16>
    %c0_57 = arith.constant 0 : index
    %c0_58 = arith.constant 0 : index
    %c640 = arith.constant 640 : index
    %153 = vector.load %arg9[%c0_57, %c0_58, %c640] : memref<1x1x1024xf32, #tpu.memory_space<vmem>>, vector<1x1x32xf32>
    %154 = vector.shape_cast %153 : vector<1x1x32xf32> to vector<1x32xf32>
    %155 = vector.broadcast %154 : vector<1x32xf32> to vector<8x32xf32>
    %156 = arith.addf %151, %155 : vector<8x32xf32>
    %c0_59 = arith.constant 0 : index
    %c0_60 = arith.constant 0 : index
    %c0_61 = arith.constant 0 : index
    %157 = vector.load %arg7[%c0_59, %c0_60, %c0_61] : memref<1x32x128xbf16, #tpu.memory_space<vmem>>, vector<1x32x128xbf16>
    %158 = vector.shape_cast %157 : vector<1x32x128xbf16> to vector<32x128xbf16>
    %cst_62 = arith.constant dense<0.000000e+00> : vector<8x128xf32>
    %159 = tpu.matmul %152, %158, %cst_62 {dimension_numbers = #tpu.dot_dimension_numbers<[1], [0], [0], [1], [0, 0, 1, 1], [], []>} : vector<8x32xbf16>, vector<32x128xbf16>, vector<8x128xf32> -> vector<8x128xf32>
    %c0_63 = arith.constant 0 : index
    %c0_64 = arith.constant 0 : index
    %c512 = arith.constant 512 : index
    %160 = vector.load %arg9[%c0_63, %c0_64, %c512] : memref<1x1x1024xf32, #tpu.memory_space<vmem>>, vector<1x1x128xf32>
    %161 = vector.shape_cast %160 : vector<1x1x128xf32> to vector<1x128xf32>
    %162 = vector.broadcast %161 : vector<1x128xf32> to vector<8x128xf32>
    %163 = arith.addf %159, %162 : vector<8x128xf32>
    %cst_65 = arith.constant 0.000000e+00 : f32
    %164 = vector.broadcast %cst_65 : f32 to vector<8x128xf32>
    %165 = arith.maximumf %163, %164 : vector<8x128xf32>
    %166 = arith.truncf %165 : vector<8x128xf32> to vector<8x128xbf16>
    %c0_66 = arith.constant 0 : index
    %c0_67 = arith.constant 0 : index
    %c0_68 = arith.constant 0 : index
    %167 = vector.load %arg8[%c0_66, %c0_67, %c0_68] : memref<1x128x32xbf16, #tpu.memory_space<vmem>>, vector<1x128x32xbf16>
    %168 = vector.shape_cast %167 : vector<1x128x32xbf16> to vector<128x32xbf16>
    %cst_69 = arith.constant dense<0.000000e+00> : vector<8x32xf32>
    %169 = tpu.matmul %166, %168, %cst_69 {dimension_numbers = #tpu.dot_dimension_numbers<[1], [0], [0], [1], [0, 0, 1, 1], [], []>} : vector<8x128xbf16>, vector<128x32xbf16>, vector<8x32xf32> -> vector<8x32xf32>
    %170 = arith.addf %156, %169 : vector<8x32xf32>
    %cst_70 = arith.constant dense<0.000000e+00> : vector<8xf32>
    %171 = vector.multi_reduction <add>, %170, %cst_70 [1] : vector<8x32xf32> to vector<8xf32>
    %172 = vector.shape_cast %171 : vector<8xf32> to vector<8x1xf32>
    %cst_71 = arith.constant 3.200000e+01 : f32
    %173 = vector.broadcast %cst_71 : f32 to vector<8x1xf32>
    %174 = arith.divf %172, %173 : vector<8x1xf32>
    %175 = arith.mulf %170, %170 : vector<8x32xf32>
    %cst_72 = arith.constant dense<0.000000e+00> : vector<8xf32>
    %176 = vector.multi_reduction <add>, %175, %cst_72 [1] : vector<8x32xf32> to vector<8xf32>
    %177 = vector.shape_cast %176 : vector<8xf32> to vector<8x1xf32>
    %cst_73 = arith.constant 3.200000e+01 : f32
    %178 = vector.broadcast %cst_73 : f32 to vector<8x1xf32>
    %179 = arith.divf %177, %178 : vector<8x1xf32>
    %180 = arith.mulf %174, %174 : vector<8x1xf32>
    %181 = arith.subf %179, %180 : vector<8x1xf32>
    %cst_74 = arith.constant 0.000000e+00 : f32
    %182 = vector.broadcast %cst_74 : f32 to vector<8x1xf32>
    %183 = arith.maximumf %181, %182 : vector<8x1xf32>
    %184 = vector.broadcast %174 : vector<8x1xf32> to vector<8x32xf32>
    %185 = arith.subf %170, %184 : vector<8x32xf32>
    %cst_75 = arith.constant 9.99999974E-6 : f32
    %186 = vector.broadcast %cst_75 : f32 to vector<8x1xf32>
    %187 = arith.addf %183, %186 : vector<8x1xf32>
    %188 = math.rsqrt %187 : vector<8x1xf32>
    %189 = vector.broadcast %188 : vector<8x1xf32> to vector<8x32xf32>
    %190 = arith.mulf %185, %189 : vector<8x32xf32>
    %c0_76 = arith.constant 0 : index
    %c0_77 = arith.constant 0 : index
    %c768 = arith.constant 768 : index
    %191 = vector.load %arg9[%c0_76, %c0_77, %c768] : memref<1x1x1024xf32, #tpu.memory_space<vmem>>, vector<1x1x32xf32>
    %192 = vector.shape_cast %191 : vector<1x1x32xf32> to vector<1x32xf32>
    %193 = vector.broadcast %192 : vector<1x32xf32> to vector<8x32xf32>
    %194 = arith.mulf %190, %193 : vector<8x32xf32>
    %c0_78 = arith.constant 0 : index
    %c0_79 = arith.constant 0 : index
    %c896 = arith.constant 896 : index
    %195 = vector.load %arg9[%c0_78, %c0_79, %c896] : memref<1x1x1024xf32, #tpu.memory_space<vmem>>, vector<1x1x32xf32>
    %196 = vector.shape_cast %195 : vector<1x1x32xf32> to vector<1x32xf32>
    %197 = vector.broadcast %196 : vector<1x32xf32> to vector<8x32xf32>
    %198 = arith.addf %194, %197 : vector<8x32xf32>
    %199 = vector.broadcast %4 : vector<8x1xf32> to vector<8x32xf32>
    %200 = arith.mulf %198, %199 : vector<8x32xf32>
    %201 = vector.shape_cast %200 : vector<8x32xf32> to vector<1x8x32xf32>
    %c0_80 = arith.constant 0 : index
    %c0_81 = arith.constant 0 : index
    %c0_82 = arith.constant 0 : index
    %202 = vector.load %arg10[%c0_80, %c0_81, %c0_82] : memref<1x8x32xf32, #tpu.memory_space<vmem>>, vector<1x8x32xf32>
    tpu.vector_store %arg10[%c0_80, %c0_81, %c0_82], %201 {strides = array<i32>} : memref<1x8x32xf32, #tpu.memory_space<vmem>>, vector<1x8x32xf32>,
    return
  }
  func.func @transform_0(%arg0: i32, %arg1: i32) -> (i32, i32, i32) {
    %c0_i32 = arith.constant 0 : i32
    %c0_i32_0 = arith.constant 0 : i32
    %c0_i32_1 = arith.constant 0 : i32
    return %arg0, %c0_i32, %c0_i32_0 : i32, i32, i32
  }
  func.func @transform_1(%arg0: i32, %arg1: i32) -> (i32, i32) {
    %c0_i32 = arith.constant 0 : i32
    %c0_i32_0 = arith.constant 0 : i32
    return %arg0, %c0_i32 : i32, i32
  }
  func.func @transform_2(%arg0: i32, %arg1: i32) -> (i32, i32, i32) {
    %c0_i32 = arith.constant 0 : i32
    %c0_i32_0 = arith.constant 0 : i32
    %c0_i32_1 = arith.constant 0 : i32
    return %arg0, %c0_i32, %c0_i32_0 : i32, i32, i32
  }
  func.func @transform_3(%arg0: i32, %arg1: i32) -> (i32, i32, i32) {
    %c0_i32 = arith.constant 0 : i32
    %c0_i32_0 = arith.constant 0 : i32
    %c0_i32_1 = arith.constant 0 : i32
    return %arg1, %c0_i32, %c0_i32_0 : i32, i32, i32
  }
  func.func @transform_4(%arg0: i32, %arg1: i32) -> (i32, i32, i32) {
    %c0_i32 = arith.constant 0 : i32
    %c0_i32_0 = arith.constant 0 : i32
    %c0_i32_1 = arith.constant 0 : i32
    return %arg1, %c0_i32, %c0_i32_0 : i32, i32, i32
  }
  func.func @transform_5(%arg0: i32, %arg1: i32) -> (i32, i32, i32) {
    %c0_i32 = arith.constant 0 : i32
    %c0_i32_0 = arith.constant 0 : i32
    %c0_i32_1 = arith.constant 0 : i32
    return %arg1, %c0_i32, %c0_i32_0 : i32, i32, i32
  }
  func.func @transform_6(%arg0: i32, %arg1: i32) -> (i32, i32, i32) {
    %c0_i32 = arith.constant 0 : i32
    %c0_i32_0 = arith.constant 0 : i32
    %c0_i32_1 = arith.constant 0 : i32
    return %arg1, %c0_i32, %c0_i32_0 : i32, i32, i32
  }
  func.func @transform_7(%arg0: i32, %arg1: i32) -> (i32, i32, i32) {
    %c0_i32 = arith.constant 0 : i32
    %c0_i32_0 = arith.constant 0 : i32
    %c0_i32_1 = arith.constant 0 : i32
    return %arg1, %c0_i32, %c0_i32_0 : i32, i32, i32
  }
  func.func @transform_8(%arg0: i32, %arg1: i32) -> (i32, i32, i32) {
    %c0_i32 = arith.constant 0 : i32
    %c0_i32_0 = arith.constant 0 : i32
    %c0_i32_1 = arith.constant 0 : i32
    return %arg0, %c0_i32, %c0_i32_0 : i32, i32, i32
  }
}

</mosaic_0001>

<bundles_post_ra>
// kernel: tpu_custom_call.1
= control target key start
LH: loop header
LB: loop body
LE: loop exit
PB: predicated region body
PF: predicated region fallthrough
CT: control target
= control target key end

     0   :  { %s3252_s0 = inlined_call_operand.hbm [shape: f32[2,8,32], index: 0, kind: input, shape index: {}]   ;;  %s3253_s1 = inlined_call_operand.hbm [shape: f32[16,1], index: 1, kind: input, shape index: {}]   ;;  %s3254_s2 = inlined_call_operand.hbm [shape: f32[2,1,8], index: 2, kind: input, shape index: {}]   ;;  %s3255_s3 = inlined_call_operand.hbm [shape: bf16[2,32,96], index: 3, kind: input, shape index: {}]   ;;  %s3256_s4 = inlined_call_operand.hbm [shape: bf16[2,32,32], index: 4, kind: input, shape index: {}]   ;;  %s3257_s5 = inlined_call_operand.hbm [shape: bf16[2,32,128], index: 5, kind: input, shape index: {}]   ;;  %s3258_s6 = inlined_call_operand.hbm [shape: bf16[2,128,32], index: 6, kind: input, shape index: {}]   ;;  %s3259_s7 = inlined_call_operand.hbm [shape: f32[2,1,1024], index: 7, kind: input, shape index: {}]   ;;  %s3260_s8 = inlined_call_operand.hbm [shape: f32[2,8,32], index: 8, kind: output, shape index: {}]  }
   0x1   :  { %3296 = sst [smem:[#allocation42_spill]] %s3253_s1 }
   0x2   :  { %3297 = sst [smem:[#allocation43_spill]] %s3255_s3 }
   0x3   :  { %3298 = sst [smem:[#allocation44_spill]] %s3257_s5 }
   0x4   :  { %3299 = sst [smem:[#allocation45_spill]] %s3260_s8 }
   0x5   :  { %13 = vsyncpa [#allocation4], 0 }
   0x6   :  { %15 = vsyncpa [#allocation4 + $0x1], 0 }
   0x7   :  { %16 = vsyncpa [#allocation7], 0 }
   0x8   :  { %18 = vsyncpa [#allocation7 + $0x1], 0 }
   0x9   :  { %19 = vsyncpa [#allocation10], 0 }
   0xa   :  { %21 = vsyncpa [#allocation10 + $0x1], 0 }
   0xb   :  { %22 = vsyncpa [#allocation13], 0 }
   0xc   :  { %24 = vsyncpa [#allocation13 + $0x1], 0 }
   0xd   :  { %25 = vsyncpa [#allocation16], 0 }
   0xe   :  { %27 = vsyncpa [#allocation16 + $0x1], 0 }
   0xf   :  { %28 = vsyncpa [#allocation5], 0 }
  0x10   :  { %30 = vsyncpa [#allocation5 + $0x1], 0  ;;  %s2558_s27 = smov 0   ;;  %s2560_s28 = smov 0  }
  0x11   :  { %s2562_s29 = smov 0   ;;  %s2564_s30 = smov 0  }
  0x12   :  { %s2566_s9 = smov 0   ;;  %s2568_s10 = smov 0  }
  0x13   :  { %s2570_s11 = smov 0   ;;  %s2572_s12 = smov 0  }
  0x14   :  { %s2574_s13 = smov 0   ;;  %s2576_s14 = smov 0  }
  0x15   :  { %s2578_s15 = smov 0  }
  0x16 LB: > { %3300 = sst [smem:[#allocation24_spill]] %s2447_s28  ;;  %s2614_s16 = sadd.s32 4294967295, %s2483_s15   ;;  %s2483_s15 = sphi %s2578_s15, %s36_s15   ;;  %s2479_s14 = sphi %s2576_s14, %s3376_s14   ;;  %s2475_s13 = sphi %s2574_s13, %s3375_s13   ;;  %s2471_s12 = sphi %s2572_s12, %s3374_s12   ;;  %s2467_s11 = sphi %s2570_s11, %s3373_s11   ;;  %s2463_s10 = sphi %s2568_s10, %s3370_s10   ;;  %s2459_s9 = sphi %s2566_s9, %s3369_s9   ;;  %s2455_s30 = sphi %s2564_s30, %s3368_s30   ;;  %s2451_s29 = sphi %s2562_s29, %s3367_s29   ;;  %s2447_s28 = sphi %s2560_s28, %s3366_s28   ;;  %s2443_s27 = sphi %s2558_s27, %s3365_s27  }
  0x17   : > { %3301 = sst [smem:[#allocation25_spill]] %s2451_s29  ;;  %s1712_s17 = sadd.s32 4294967294, %s2483_s15  }
  0x18   : > { %3302 = sst [smem:[#allocation26_spill]] %s2455_s30  ;;  %s45_s18 = sadd.s32 1, %s2475_s13 }
  0x19   : > { %3303 = sst [smem:[#allocation27_spill]] %s2459_s9  ;;  %s48_s19 = sadd.s32 1, %s2479_s14 }
  0x1a   : > { %3304 = sst [smem:[#allocation28_spill]] %s2463_s10  ;;  %p46_p0 = scmp.ge.s32.totalorder %s45_s18, 2 }
  0x1b   : > { %3305 = sst [smem:[#allocation29_spill]] %s2467_s11  ;;  %s55_s20 = sadd.s32 1, %s2463_s10 }
  0x1c   : > { %3306 = sst [smem:[#allocation30_spill]] %s2471_s12  ;;  %p62_p1 = scmp.ne.s32.totalorder %s2463_s10, %s2459_s9 }
  0x1d   : > { %3307 = sst [smem:[#allocation31_spill]] %s2483_s15  ;;  %p63_p2 = scmp.eq.s32.totalorder %s2483_s15, 0 }
  0x1e   : > { %3308 = sst [smem:[#allocation32_spill]] %s2614_s16  ;;  %s3378_s18 = smov (%p46_p0, %s45_s18), 0 }
  0x1f   : > { %3309 = sst [smem:[#allocation33_spill]] %s3378_s18  ;;  %s3380_s19 = smov (!%p46_p0, %s48_s19), %s2479_s14 }
  0x20   : > { %p2631_p3 = por %p63_p2, %p62_p1  ;;  %p3263_p4 = scmp.ne.s32.totalorder %s2459_s9, %s2455_s30 }
  0x21   : > { %p50_p5 = scmp.ge.s32.totalorder %s3380_s19, 2  ;;  %p69_p6 = scmp.eq.s32.totalorder %s2614_s16, 0 }
  0x22   : > { %s130_s22 = ssub.s32 %s2475_s13, %s3378_s18  ;;  %s133_s23 = sadd.s32 1, %s2451_s29 }
  0x23   : > { %s3382_s19 = smov (%p50_p5, %s3380_s19), 0  ;;  %p2648_p7 = por %p69_p6, %p3263_p4 }
  0x24   : > { %3311 = sst [smem:[#allocation34_spill]] %s3382_s19  ;;  %p131_p8 = scmp.eq.s32.totalorder %s130_s22, 0 }
  0x25   : > { %s3312_s24 = scalar_select %p2648_p7, 1, 0 }
  0x26   : > { %s52_s25 = ssub.s32 %s2479_s14, %s3382_s19  ;;  %p140_p9 = scmp.ne.s32.totalorder %s2451_s29, %s2447_s28 }
  0x27   : > { %3313 = sst [smem:[#allocation35_spill]] %s3312_s24  ;;  %p53_p10 = scmp.eq.s32.totalorder %s52_s25, 0 }
  0x28   : > { %p146_p11 = scmp.ne.s32.totalorder %s2447_s28, %s2443_s27  ;;  %p2666_p12 = por %p140_p9, %p63_p2 }
  0x29   : > { %s2659_s26 = scalar_select %p131_p8, %s2451_s29, %s133_s23  }
  0x2a   : > { %s2662_s18 = scalar_select %p53_p10, %s2463_s10, %s55_s20  }
  0x2b   : > { %3314 = sst [smem:[#allocation36_spill]] %s2659_s26  ;;  %p2672_p13 = por %p146_p11, %p69_p6 }
  0x2c   : > { %3315 = sst [smem:[#allocation37_spill]] %s2662_s18  ;;  %p274_p0 = scmp.eq.s32.totalorder %s2614_s16, 3 }
  0x2d   : > { %s3316_s8 = scalar_select %p2666_p12, 1, 0 }
  0x2e   : > { %s3317_s22 = scalar_select %p2672_p13, 1, 0 }
  0x2f   : > { %p280_p5 = scmp.eq.s32.totalorder %s1712_s17, 3  ;;  %p3273_p4 = scmp.lt.s32.totalorder %s2483_s15, 4 }
  0x30   : > { %3318 = sst [smem:[#allocation38_spill]] %s3317_s22  ;;  %p2681_p7 = por %p274_p0, %p62_p1 }
  0x31   : > { %p3321_p8 = scmp.ne.s32.totalorder %s2459_s9, %s2455_s30  ;;  %s2693_s23 = sand.u32 1, %s2463_s10  }
  0x32   : > { %s3319_s27 = scalar_select %p2681_p7, 1, 0 }
  0x33   : > { %p2688_p10 = por %p280_p5, %p3321_p8  ;;  %s3271_s25 = sshll.u32 %s2479_s14, 7 }
  0x34   : > { %3320 = sst [smem:[#allocation39_spill]] %s3319_s27  ;;  %s3272_s19 = sshll.u32 %s2693_s23, 3 }
  0x35   : > { %s3322_s20 = scalar_select %p2688_p10, 1, 0 }
  0x36   : > { %p2701_p2 = pnand %p3273_p4, %p2631_p3  ;;  %s2706_s18 = sand.u32 1, %s2483_s15  }
  0x37   : > { %3323 = sst [smem:[#allocation40_spill]] %s3322_s20  ;;  %s3325_s1 = sld [smem:[#allocation42_spill]] }
  0x38   : > { %s3324_s17 = scalar_select %p2701_p2, 1, 0 }
  0x39   : > { %s322_s21 = scalar_lea.vmem [#allocation6], %s3272_s19  ;;  %p2724_p3 = pneg %p2701_p2 }
  0x3a   : > { %s329_s20 = sshll.u32 %s322_s21, 4  ;;  %s2717_s20 = int_to_ptr.vmem [resolvable:$true] %s329_s20 }
  0x3b   : > { %s3326_s11 = scalar_select %p2724_p3, 1, 0 }
  0x3d   : > { %s2713_s10 = scalar_lea.hbm %s3325_s1, %s3271_s25  ;;  %s2110_s25 = scalar_lea.hbm %s3325_s1, 256 }
  0x3e   : > { %s2105_s12 = scalar_lea.hbm %s2713_s10, 128  ;;  %p2111_p11 = scmp.lt.u32.totalorder %s2713_s10, %s3325_s1 }
  0x3f   : > { %p2106_p1 = scmp.ne.s32.totalorder %s2713_s10, %s2105_s12  ;;  %p2112_p0 = scmp.lt.u32.totalorder %s2110_s25, %s2105_s12 }
  0x40   : > { %p2114_p8 = scmp.lt.u32.totalorder %s2105_s12, %s2713_s10 }
  0x41   : > { %p2108_p6 = pnand %p2724_p3, %p2106_p1  ;;  %p2113_p5 = por %p2112_p0, %p2111_p11 }
  0x43   : > { %p2109_p9 = pneg %p2108_p6  ;;  %p2115_p4 = por %p2114_p8, %p2113_p5 }
  0x45   : > { %p2116_p10 = pnand %p2115_p4, %p2109_p9 }
  0x47   : > { %2119 = shalt.err (!%p2116_p10)
}
  0x48   : > { %s2120_s27 = scalar_lea.vmem %s2717_s20, 128  ;;  %s2485_s30 = smov [#allocation6]  }
  0x49   : > { %p2121_p1 = scmp.ne.s32.totalorder %s2717_s20, %s2120_s27  ;;  %s2125_s26 = sshll.u32 %s2485_s30, 4  ;;  %s2126_s26 = int_to_ptr.vmem [resolvable:$false] %s2125_s26 }
  0x4a   : > { %s2127_s19 = scalar_lea.vmem %s2126_s26, 256  ;;  %p2128_p13 = scmp.lt.s32.totalorder %s2717_s20, %s2126_s26 }
  0x4b   : > { %p2123_p6 = pnand %p2121_p1, %p2724_p3  ;;  %p2129_p12 = scmp.lt.s32.totalorder %s2127_s19, %s2120_s27 }
  0x4d   : > { %p2124_p7 = pneg %p2123_p6  ;;  %p2130_p11 = por %p2129_p12, %p2128_p13 }
  0x4f   : > { %p2131_p0 = pnand %p2130_p11, %p2124_p7 }
  0x51   : > { %2134 = shalt.err (!%p2131_p0)
}
  0x52   : > { %s3327_s12 = scalar_lea.sflag [#allocation7], %s2706_s18  ;;  %p3328_p4 = scmp.ne.s32.totalorder %s3316_s8, 0 }
  0x53   : > { %1938 = dma.hbm_to_vmem [thread:$0]  (!%p2701_p2), %s2713_s10, 128, %s2717_s20, %s3327_s12  }
  0x54   : > { %p3329_p10 = scmp.lt.s32.totalorder %s2483_s15, 4  ;;  %p1735_p7 = scmp.ge.s32.totalorder %s2483_s15, 1 }
  0x55   : > { %p454_p12 = scmp.lt.s32.totalorder %s2483_s15, 5  ;;  %s2760_s25 = sand.u32 1, %s2451_s29  }
  0x56   : > { %p2753_p9 = pnand %p3329_p10, %p3328_p4  ;;  %s2767_s30 = sshll.u32 %s2760_s25, 4 }
  0x57   : > { %p2762_p13 = pnand %p1735_p7, %p454_p12  ;;  %s2770_s10 = sshll.u32 %s2475_s13, 8 }
  0x58   : > { %s3330_s27 = scalar_select %p2753_p9, 1, 0 }
  0x59   : > { %s3331_s21 = scalar_select %p2762_p13, 1, 0 }
  0x5a   : > { %s3333_s3 = sld [smem:[#allocation43_spill]]  ;;  %s357_s19 = scalar_lea.vmem [#allocation9], %s2767_s30 }
  0x5b   : > { %3332 = sst [smem:[#allocation41_spill]] %s3331_s21  ;;  %s364_s12 = sshll.u32 %s357_s19, 4  ;;  %s2779_s12 = int_to_ptr.vmem [resolvable:$true] %s364_s12 }
  0x5c   : > { %p2786_p8 = pneg %p2753_p9 }
  0x5e   : > { %s3334_s15 = scalar_select %p2786_p8, 1, 0 }
  0x60   : > { %s2776_s26 = scalar_lea.hbm %s3333_s3, %s2770_s10  ;;  %s2140_s22 = scalar_lea.hbm %s3333_s3, 512 }
  0x61   : > { %s2135_s29 = scalar_lea.hbm %s2776_s26, 256  ;;  %p2141_p11 = scmp.lt.u32.totalorder %s2776_s26, %s3333_s3 }
  0x62   : > { %p2136_p5 = scmp.ne.s32.totalorder %s2776_s26, %s2135_s29  ;;  %p2142_p0 = scmp.lt.u32.totalorder %s2140_s22, %s2135_s29 }
  0x63   : > { %p2144_p10 = scmp.lt.u32.totalorder %s2135_s29, %s2776_s26 }
  0x64   : > { %p2138_p1 = pnand %p2786_p8, %p2136_p5  ;;  %p2143_p4 = por %p2142_p0, %p2141_p11 }
  0x66   : > { %p2139_p6 = pneg %p2138_p1  ;;  %p2145_p7 = por %p2144_p10, %p2143_p4 }
  0x68   : > { %p2146_p12 = pnand %p2145_p7, %p2139_p6 }
  0x6a   : > { %2149 = shalt.err (!%p2146_p12)
}
  0x6b   : > { %s2150_s1 = scalar_lea.vmem %s2779_s12, 256  ;;  %s2486_s8 = smov [#allocation9]  }
  0x6c   : > { %p2151_p5 = scmp.ne.s32.totalorder %s2779_s12, %s2150_s1  ;;  %s2155_s20 = sshll.u32 %s2486_s8, 4  ;;  %s2156_s20 = int_to_ptr.vmem [resolvable:$false] %s2155_s20 }
  0x6d   : > { %s2157_s28 = scalar_lea.vmem %s2156_s20, 512  ;;  %p2158_p2 = scmp.lt.s32.totalorder %s2779_s12, %s2156_s20 }
  0x6e   : > { %p2153_p1 = pnand %p2151_p5, %p2786_p8  ;;  %p2159_p3 = scmp.lt.s32.totalorder %s2157_s28, %s2150_s1 }
  0x70   : > { %p2154_p13 = pneg %p2153_p1  ;;  %p2160_p11 = por %p2159_p3, %p2158_p2 }
  0x72   : > { %p2161_p0 = pnand %p2160_p11, %p2154_p13 }
  0x74   : > { %2164 = shalt.err (!%p2161_p0)
}
  0x75   : > { %s2487_s29 = smov 64   ;;  %s2488_s22 = smov 4  }
  0x76   : > { %s3335_s19 = scalar_lea.sflag [#allocation10], %s2706_s18  ;;  %s3336_s5 = sld [smem:[#allocation44_spill]] }
  0x77   : > { %1944 = dma.hbm_to_vmem [thread:$0]  (!%p2753_p9), %s2776_s26, 256, %s2779_s12, %s3335_s19, %s2487_s29, %s2487_s29, %s2488_s22  }
  0x78   : > { %s399_s28 = scalar_lea.vmem [#allocation12], %s2767_s30  ;;  %s396_s16 = scalar_lea.sflag [#allocation13], %s2706_s18 }
  0x79   : > { %s406_s3 = sshll.u32 %s399_s28, 4  ;;  %s2821_s3 = int_to_ptr.vmem [resolvable:$true] %s406_s3 }
  0x7c   : > { %s2818_s20 = scalar_lea.hbm %s3336_s5, %s2770_s10  ;;  %s2170_s19 = scalar_lea.hbm %s3336_s5, 512 }
  0x7d   : > { %s2165_s24 = scalar_lea.hbm %s2818_s20, 256  ;;  %p2171_p6 = scmp.lt.u32.totalorder %s2818_s20, %s3336_s5 }
  0x7e   : > { %p2166_p2 = scmp.ne.s32.totalorder %s2818_s20, %s2165_s24  ;;  %p2172_p4 = scmp.lt.u32.totalorder %s2170_s19, %s2165_s24 }
  0x7f   : > { %p2174_p7 = scmp.lt.u32.totalorder %s2165_s24, %s2818_s20 }
  0x80   : > { %p2168_p3 = pnand %p2166_p2, %p2786_p8  ;;  %p2173_p10 = por %p2172_p4, %p2171_p6 }
  0x82   : > { %p2169_p13 = pneg %p2168_p3  ;;  %p2175_p12 = por %p2174_p7, %p2173_p10 }
  0x84   : > { %p2176_p5 = pnand %p2175_p12, %p2169_p13 }
  0x86   : > { %2179 = shalt.err (!%p2176_p5)
}
  0x87   : > { %s2180_s28 = scalar_lea.vmem %s2821_s3, 256  ;;  %s2489_s26 = smov [#allocation12]  }
  0x88   : > { %p2181_p1 = scmp.ne.s32.totalorder %s2821_s3, %s2180_s28  ;;  %s2185_s12 = sshll.u32 %s2489_s26, 4  ;;  %s2186_s12 = int_to_ptr.vmem [resolvable:$false] %s2185_s12 }
  0x89   : > { %s2187_s1 = scalar_lea.vmem %s2186_s12, 512  ;;  %p2188_p2 = scmp.lt.s32.totalorder %s2821_s3, %s2186_s12 }
  0x8a   : > { %p2183_p11 = pnand %p2181_p1, %p2786_p8  ;;  %p2189_p3 = scmp.lt.s32.totalorder %s2187_s1, %s2180_s28 }
  0x8c   : > { %p2184_p0 = pneg %p2183_p11  ;;  %p2190_p6 = por %p2189_p3, %p2188_p2 }
  0x8e   : > { %p2191_p4 = pnand %p2190_p6, %p2184_p0 }
  0x90   : > { %2194 = shalt.err (!%p2191_p4)
}
  0x91   : > { %1950 = dma.hbm_to_vmem [thread:$0]  (!%p2753_p9), %s2818_s20, 256, %s2821_s3, %s396_s16, %s2487_s29, %s2487_s29, %s2488_s22  }
  0x92   : > { %s3337_s24 = sshll.u32 %s2479_s14, 7  ;;  %s3338_s26 = sshll.u32 %s2693_s23, 3 }
  0x93   : > { %s2855_s28 = scalar_lea.hbm %s3252_s0, %s3337_s24  ;;  %s304_s12 = scalar_lea.vmem [#allocation3], %s3338_s26 }
  0x94   : > { %s311_s1 = sshll.u32 %s304_s12, 4  ;;  %s1719_s5 = sshll.u32 %s2479_s14, 4  ;;  %s2859_s1 = int_to_ptr.vmem [resolvable:$true] %s311_s1 }
  0x95   : > { %s301_s9 = scalar_lea.sflag [#allocation4], %s2693_s23  ;;  %s2195_s21 = scalar_lea.hbm %s2855_s28, 128 }
  0x96   : > { %p2196_p13 = scmp.ne.s32.totalorder %s2855_s28, %s2195_s21  ;;  %p3339_p10 = scmp.ne.s32.totalorder %s3326_s11, 0 }
  0x97   : > { %s2200_s24 = scalar_lea.hbm %s3252_s0, 256  ;;  %p2201_p5 = scmp.lt.u32.totalorder %s2855_s28, %s3252_s0 }
  0x98   : > { %p2198_p7 = pnand %p2196_p13, %p3339_p10  ;;  %p2202_p1 = scmp.lt.u32.totalorder %s2200_s24, %s2195_s21 }
  0x99   : > { %p2204_p0 = scmp.lt.u32.totalorder %s2195_s21, %s2855_s28 }
  0x9a   : > { %p2199_p12 = pneg %p2198_p7  ;;  %p2203_p11 = por %p2202_p1, %p2201_p5 }
  0x9c   : > { %p2205_p2 = por %p2204_p0, %p2203_p11 }
  0x9e   : > { %p2206_p3 = pnand %p2205_p2, %p2199_p12 }
  0xa0   : > { %2209 = shalt.err (!%p2206_p3)
}
  0xa1   : > { %s2210_s26 = scalar_lea.vmem %s2859_s1, 128  ;;  %s2490_s12 = smov [#allocation3]  }
  0xa2   : > { %p2211_p6 = scmp.ne.s32.totalorder %s2859_s1, %s2210_s26  ;;  %s2215_s3 = sshll.u32 %s2490_s12, 4  ;;  %s2216_s3 = int_to_ptr.vmem [resolvable:$false] %s2215_s3 }
  0xa3   : > { %s2217_s20 = scalar_lea.vmem %s2216_s3, 256  ;;  %p2218_p7 = scmp.lt.s32.totalorder %s2859_s1, %s2216_s3 }
  0xa4   : > { %p2213_p4 = pnand %p2211_p6, %p3339_p10  ;;  %p2219_p9 = scmp.lt.s32.totalorder %s2217_s20, %s2210_s26 }
  0xa6   : > { %p2214_p13 = pneg %p2213_p4  ;;  %p2220_p5 = por %p2219_p9, %p2218_p7 }
  0xa8   : > { %p2221_p1 = pnand %p2220_p5, %p2214_p13 }
  0xaa   : > { %2224 = shalt.err (!%p2221_p1)
}
  0xab   : > { %p3340_p12 = scmp.ne.s32.totalorder %s3324_s17, 0  ;;  %s2889_s19 = scalar_lea.hbm %s3254_s2, %s1719_s5 }
  0xac   : > { %s339_s8 = scalar_lea.vmem [#allocation8], %s2693_s23  ;;  %s2225_s12 = scalar_lea.hbm %s2889_s19, 16 }
  0xad   : > { %1935 = dma.hbm_to_vmem [thread:$0]  (!%p3340_p12), %s2855_s28, 128, %s2859_s1, %s301_s9  }
  0xae   : > { %s346_s26 = sshll.u32 %s339_s8, 4  ;;  %p2226_p9 = scmp.ne.s32.totalorder %s2889_s19, %s2225_s12  ;;  %s347_s26 = int_to_ptr.vmem [resolvable:$true] %s346_s26 }
  0xaf   : > { %s2230_s28 = scalar_lea.hbm %s3254_s2, 32  ;;  %p2231_p2 = scmp.lt.u32.totalorder %s2889_s19, %s3254_s2 }
  0xb0   : > { %p2228_p11 = pnand %p2226_p9, %p3339_p10  ;;  %p2232_p3 = scmp.lt.u32.totalorder %s2230_s28, %s2225_s12 }
  0xb1   : > { %p2234_p4 = scmp.lt.u32.totalorder %s2225_s12, %s2889_s19 }
  0xb2   : > { %p2229_p0 = pneg %p2228_p11  ;;  %p2233_p6 = por %p2232_p3, %p2231_p2 }
  0xb4   : > { %p2235_p13 = por %p2234_p4, %p2233_p6 }
  0xb6   : > { %p2236_p7 = pnand %p2235_p13, %p2229_p0 }
  0xb8   : > { %2239 = shalt.err (!%p2236_p7)
}
  0xb9   : > { %s2240_s5 = scalar_lea.vmem %s347_s26, 16  ;;  %s2491_s23 = smov [#allocation8]  }
  0xba   : > { %p2241_p5 = scmp.ne.s32.totalorder %s347_s26, %s2240_s5  ;;  %s2245_s21 = sshll.u32 %s2491_s23, 4  ;;  %s2246_s21 = int_to_ptr.vmem [resolvable:$false] %s2245_s21 }
  0xbb   : > { %s2247_s24 = scalar_lea.vmem %s2246_s21, 32  ;;  %p2248_p11 = scmp.lt.s32.totalorder %s347_s26, %s2246_s21 }
  0xbc   : > { %p2243_p1 = pnand %p2241_p5, %p3339_p10  ;;  %p2249_p8 = scmp.lt.s32.totalorder %s2247_s24, %s2240_s5 }
  0xbe   : > { %p2244_p9 = pneg %p2243_p1  ;;  %p2250_p12 = por %p2249_p8, %p2248_p11 }
  0xc0   : > { %p2251_p2 = pnand %p2250_p12, %p2244_p9 }
  0xc2   : > { %2254 = shalt.err (!%p2251_p2)
}
  0xc3   : > { %p3341_p3 = scmp.ne.s32.totalorder %s3324_s17, 0  ;;  %s3342_s8 = scalar_lea.sflag [#allocation7], %s2706_s18 }
  0xc4   : > { %s2915_s3 = scalar_lea.hbm %s3256_s4, %s2770_s10  ;;  %s378_s9 = scalar_lea.vmem [#allocation11], %s2767_s30 }
  0xc5   : > { %1941 = dma.hbm_to_vmem [thread:$0]  (!%p3341_p3), %s2889_s19, 16, %s347_s26, %s3342_s8  }
  0xc6   : > { %s385_s28 = sshll.u32 %s378_s9, 4  ;;  %s1729_s17 = sshll.u32 %s2760_s25, 6  ;;  %s2918_s28 = int_to_ptr.vmem [resolvable:$true] %s385_s28 }
  0xc7   : > { %s2255_s1 = scalar_lea.hbm %s2915_s3, 256  ;;  %p3343_p10 = scmp.ne.s32.totalorder %s3334_s15, 0 }
  0xc8   : > { %p2256_p8 = scmp.ne.s32.totalorder %s2915_s3, %s2255_s1  ;;  %s2260_s20 = scalar_lea.hbm %s3256_s4, 512 }
  0xc9   : > { %p2261_p6 = scmp.lt.u32.totalorder %s2915_s3, %s3256_s4  ;;  %p2262_p4 = scmp.lt.u32.totalorder %s2260_s20, %s2255_s1 }
  0xca   : > { %p2258_p12 = pnand %p2256_p8, %p3343_p10  ;;  %p2264_p7 = scmp.lt.u32.totalorder %s2255_s1, %s2915_s3 }
  0xcb   : > { %p2263_p13 = por %p2262_p4, %p2261_p6 }
  0xcc   : > { %p2259_p0 = pneg %p2258_p12 }
  0xcd   : > { %p2265_p5 = por %p2264_p7, %p2263_p13 }
  0xcf   : > { %p2266_p1 = pnand %p2265_p5, %p2259_p0 }
  0xd1   : > { %2269 = shalt.err (!%p2266_p1)
}
  0xd2   : > { %s2270_s30 = scalar_lea.vmem %s2918_s28, 256  ;;  %s2492_s23 = smov [#allocation11]  }
  0xd3   : > { %p2271_p9 = scmp.ne.s32.totalorder %s2918_s28, %s2270_s30  ;;  %s2275_s21 = sshll.u32 %s2492_s23, 4  ;;  %s2276_s21 = int_to_ptr.vmem [resolvable:$false] %s2275_s21 }
  0xd4   : > { %s2277_s24 = scalar_lea.vmem %s2276_s21, 512  ;;  %p2278_p3 = scmp.lt.s32.totalorder %s2918_s28, %s2276_s21 }
  0xd5   : > { %p2273_p11 = pnand %p2271_p9, %p3343_p10  ;;  %p2279_p8 = scmp.lt.s32.totalorder %s2277_s24, %s2270_s30 }
  0xd7   : > { %p2274_p2 = pneg %p2273_p11  ;;  %p2280_p12 = por %p2279_p8, %p2278_p3 }
  0xd9   : > { %p2281_p6 = pnand %p2280_p12, %p2274_p2 }
  0xdb   : > { %2284 = shalt.err (!%p2281_p6)
}
  0xdc   : > { %p3344_p0 = scmp.ne.s32.totalorder %s3330_s27, 0  ;;  %s3345_s8 = scalar_lea.sflag [#allocation10], %s2706_s18 }
  0xdd   : > { %s1786_s11 = sshll.u32 %s2475_s13, 10  ;;  %s420_s19 = scalar_lea.vmem [#allocation14], %s1729_s17 }
  0xde   : > { %1947 = dma.hbm_to_vmem [thread:$0]  (!%p3344_p0), %s2915_s3, 256, %s2918_s28, %s3345_s8, %s2487_s29, %s2487_s29, %s2488_s22  }
  0xdf   : > { %s2951_s1 = scalar_lea.hbm %s3258_s6, %s1786_s11  ;;  %s427_s26 = sshll.u32 %s420_s19, 4  ;;  %s2955_s26 = int_to_ptr.vmem [resolvable:$true] %s427_s26 }
  0xe0   : > { %s2285_s20 = scalar_lea.hbm %s2951_s1, 1024  ;;  %s2290_s10 = scalar_lea.hbm %s3258_s6, 2048 }
  0xe1   : > { %p2286_p4 = scmp.ne.s32.totalorder %s2951_s1, %s2285_s20  ;;  %p2291_p5 = scmp.lt.u32.totalorder %s2951_s1, %s3258_s6 }
  0xe2   : > { %p2292_p1 = scmp.lt.u32.totalorder %s2290_s10, %s2285_s20  ;;  %p2294_p11 = scmp.lt.u32.totalorder %s2285_s20, %s2951_s1 }
  0xe3   : > { %p2288_p13 = pnand %p2286_p4, %p3343_p10 }
  0xe4   : > { %p2293_p9 = por %p2292_p1, %p2291_p5 }
  0xe5   : > { %p2289_p7 = pneg %p2288_p13 }
  0xe6   : > { %p2295_p2 = por %p2294_p11, %p2293_p9 }
  0xe8   : > { %p2296_p3 = pnand %p2295_p2, %p2289_p7 }
  0xea   : > { %2299 = shalt.err (!%p2296_p3)
}
  0xeb   : > { %s2300_s17 = scalar_lea.vmem %s2955_s26, 1024  ;;  %s2493_s23 = smov [#allocation14]  }
  0xec   : > { %p2301_p8 = scmp.ne.s32.totalorder %s2955_s26, %s2300_s17  ;;  %s2305_s21 = sshll.u32 %s2493_s23, 4  ;;  %s2306_s21 = int_to_ptr.vmem [resolvable:$false] %s2305_s21 }
  0xed   : > { %s2307_s24 = scalar_lea.vmem %s2306_s21, 2048  ;;  %p2308_p4 = scmp.lt.s32.totalorder %s2955_s26, %s2306_s21 }
  0xee   : > { %p2303_p12 = pnand %p2301_p8, %p3343_p10  ;;  %p2309_p13 = scmp.lt.s32.totalorder %s2307_s24, %s2300_s17 }
  0xf0   : > { %p2304_p6 = pneg %p2303_p12  ;;  %p2310_p5 = por %p2309_p13, %p2308_p4 }
  0xf2   : > { %p2311_p1 = pnand %p2310_p5, %p2304_p6 }
  0xf4   : > { %2314 = shalt.err (!%p2311_p1)
}
  0xf5   : > { %1953 = dma.hbm_to_vmem [thread:$0]  (!%p3344_p0), %s2951_s1, 1024, %s2955_s26, %s396_s16, %s2487_s29, %s2487_s29, %s2488_s22  }
  0xf6   : > { %s1732_s8 = sshll.u32 %s2760_s25, 3  ;;  %s1787_s11 = sshll.u32 %s2475_s13, 7 }
  0xf7   : > { %s2988_s19 = scalar_lea.hbm %s3259_s7, %s1787_s11  ;;  %s441_s20 = scalar_lea.vmem [#allocation15], %s1732_s8 }
  0xf8   : > { %s449_s18 = sshll.u32 %s441_s20, 4  ;;  %s438_s3 = scalar_lea.sflag [#allocation16], %s2760_s25  ;;  %s450_s18 = int_to_ptr.vmem [resolvable:$true] %s449_s18 }
  0xf9   : > { %s2315_s28 = scalar_lea.hbm %s2988_s19, 128  ;;  %s2320_s22 = scalar_lea.hbm %s3259_s7, 256 }
  0xfa   : > { %p2316_p7 = scmp.ne.s32.totalorder %s2988_s19, %s2315_s28  ;;  %p2321_p2 = scmp.lt.u32.totalorder %s2988_s19, %s3259_s7 }
  0xfb   : > { %p2322_p3 = scmp.lt.u32.totalorder %s2320_s22, %s2315_s28  ;;  %p2324_p12 = scmp.lt.u32.totalorder %s2315_s28, %s2988_s19 }
  0xfc   : > { %p2318_p9 = pnand %p2316_p7, %p3343_p10 }
  0xfd   : > { %p2323_p8 = por %p2322_p3, %p2321_p2 }
  0xfe   : > { %p2319_p11 = pneg %p2318_p9 }
  0xff   : > { %p2325_p6 = por %p2324_p12, %p2323_p8 }
 0x101   : > { %p2326_p4 = pnand %p2325_p6, %p2319_p11 }
 0x103   : > { %2329 = shalt.err (!%p2326_p4)
}
 0x104   : > { %s2330_s25 = scalar_lea.vmem %s450_s18, 128  ;;  %s2494_s10 = smov [#allocation15]  }
 0x105   : > { %p2331_p13 = scmp.ne.s32.totalorder %s450_s18, %s2330_s25  ;;  %s2335_s5 = sshll.u32 %s2494_s10, 4  ;;  %s2336_s5 = int_to_ptr.vmem [resolvable:$false] %s2335_s5 }
 0x106   : > { %s2337_s30 = scalar_lea.vmem %s2336_s5, 256  ;;  %p2338_p7 = scmp.lt.s32.totalorder %s450_s18, %s2336_s5 }
 0x107   : > { %p2333_p5 = pnand %p2331_p13, %p3343_p10  ;;  %p2339_p9 = scmp.lt.s32.totalorder %s2337_s30, %s2330_s25 }
 0x109   : > { %p2334_p1 = pneg %p2333_p5  ;;  %p2340_p0 = por %p2339_p9, %p2338_p7 }
 0x10b   : > { %p2341_p2 = pnand %p2340_p0, %p2334_p1 }
 0x10d   : > { %2344 = shalt.err (!%p2341_p2)
}
 0x10e   : > { %p3346_p3 = scmp.ne.s32.totalorder %s3330_s27, 0  ;;  %s3347_s17 = sld [smem:[#allocation41_spill]] }
 0x110   : > { %1956 = dma.hbm_to_vmem [thread:$0]  (!%p3346_p3), %s2988_s19, 128, %s450_s18, %s438_s3  }
 0x114   : > { %p3348_p11 = scmp.ne.s32.totalorder %s3347_s17, 0 }
 0x115   : > { %s3349_s23 = sld [smem:[#allocation27_spill]] (!%p3348_p11)  ;;  %s3350_s15 = sld [smem:[#allocation35_spill]] (!%p3348_p11) }
 0x116   : > { %458 = sbr.rel (%p3348_p11) target bundleno = 2611 (0xa33), region = 52 }
 0x11b   : > { %s3011_s21 = sand.u32 (!%p3348_p11), 1, %s3349_s23   ;;  %p3351_p10 = scmp.ne.s32.totalorder (!%p3348_p11), %s3350_s15, 0 }
 0x11c   : > { %s3014_s24 = sshll.u32 (!%p3348_p11), %s3011_s21, 3  ;;  %s461_s8 = scalar_lea.sflag (!%p3348_p11), [#allocation4], %s3011_s21 }
 0x11d   : > { %s464_s11 = scalar_lea.vmem [#allocation3], %s3014_s24 }
 0x11e   : > { %2418 = dma.done.wait (%p3351_p10), %s461_s8, 128  }
 0x11f   : > { %2420 = vsyncadd (%p3351_p10), %s461_s8, 4294967168  ;;  %s3352_s27 = sld [smem:[#allocation32_spill]]  ;;  %s473_s19 = scalar_lea.vmem [#allocation6], %s3014_s24 }
 0x125   : > { %s469_s12 = sand.u32 1, %s3352_s27  }
 0x126   : > { %s470_s9 = scalar_lea.sflag [#allocation7], %s469_s12 }
 0x127   : > { %2422 = dma.done.wait (%p3351_p10), %s470_s9, 144  }
 0x128   : > { %2424 = vsyncadd (%p3351_p10), %s470_s9, 4294967152  ;;  %s3353_s20 = sld [smem:[#allocation24_spill]]  ;;  %s3354_s18 = sld [smem:[#allocation38_spill]] }
 0x129   : > { %s481_s16 = scalar_lea.vmem [#allocation8], %s3011_s21  ;;  %s487_s29 = scalar_lea.sflag [#allocation10], %s469_s12 }
 0x12e   : > { %s488_s3 = sand.u32 1, %s3353_s20   ;;  %p3355_p0 = scmp.ne.s32.totalorder %s3354_s18, 0 }
 0x12f   : > { %s3029_s28 = sshll.u32 %s488_s3, 4 }
 0x130   : > { %s490_s22 = scalar_lea.vmem [#allocation9], %s3029_s28 }
 0x131   : > { %2426 = dma.done.wait (%p3355_p0), %s487_s29, 512  }
 0x132   : > { %2428 = vsyncadd (%p3355_p0), %s487_s29, 4294966784  ;;  %s499_s1 = scalar_lea.vmem [#allocation11], %s3029_s28  ;;  %s505_s26 = scalar_lea.sflag [#allocation13], %s469_s12 }
 0x133   : > { %s508_s25 = scalar_lea.vmem [#allocation12], %s3029_s28 }
 0x134   : > { %2430 = dma.done.wait (%p3355_p0), %s505_s26, 1280  }
 0x135   : > { %2432 = vsyncadd (%p3355_p0), %s505_s26, 4294966016  ;;  %s1741_s10 = sshll.u32 %s488_s3, 6  ;;  %s1742_s5 = sshll.u32 %s488_s3, 3 }
 0x136   : > { %s3043_s30 = scalar_lea.vmem [#allocation14], %s1741_s10  ;;  %s523_s17 = scalar_lea.sflag [#allocation16], %s488_s3 }
 0x137   : > { %s3045_s23 = scalar_lea.vmem [#allocation15], %s1742_s5 }
 0x138   : > { %2434 = dma.done.wait (%p3355_p0), %s523_s17, 128  }
 0x139   : > { %2436 = vsyncadd (%p3355_p0), %s523_s17, 4294967168  ;;  %s3052_s15 = scalar_lea.vmem [#allocation17], %s3014_s24  ;;  %s3356_s8 = sld [smem:[#allocation29_spill]] }
 0x13f   : > { %p1744_p8 = scmp.ne.s32.totalorder %s3356_s8, 0 }
 0x140   : > { %v598_v0 = vld [vmem:[%s464_s11] sm:$0xff] (!%p1744_p8)  ;;  %vm599_vm0 = vcmask (!%p1744_p8), 261120  }
 0x141   : > { %597 = sbr.rel (%p1744_p8) target bundleno = 328 (0x148), region = 88  ;;  %600 = vst.msk [vmem:[%s3052_s15] sm:$0xff] (!%p1744_p8), %vm599_vm0, %v598_v0 }
 0x148 PF: > { %v2071_v1 = vld [vmem:[%s490_s22] sm:$0xff]   ;;  %v2495_v2 = vmov 0.0   ;;  %v2072_v3 = vld [vmem:[%s490_s22 + $0x8] sm:$0xff]   ;;  %vm2496_vm1 = vmmov 0   ;;  %vm628_vm2 = vcmask 261120   ;;  %s2497_s11 = smov 120  }
 0x149   : > { %1822 = vmatprep.subr.bf16.mxu0 %v2495_v2  ;;  %1842 = vmatprep.subr.bf16.mxu1 %v2495_v2  ;;  %v3061_v4 = vld [vmem:[%s3052_s15] sm:$0xff]  ;;  %v1745_v6 = vld [vmem:[%s3045_s23] ss:$0 sm:$0xff]  ;;  %s2498_s27 = smov 96   ;;  %s2499_s12 = smov 80   ;;  %vm682_vm3 = vcmask 64512  }
 0x14a   : > { %1823 = vmatpush3.bf16.msra.mxu0 %v2071_v1  ;;  %1826 = vmatprep.mubr.msk.bf16.mxu0 %vm2496_vm1, %v2495_v2  ;;  %v604_v5 = vpack.c.bf16 %v3061_v4, %v3061_v4  ;;  %s2500_s9 = smov 88   ;;  %s2501_s20 = smov 72   ;;  %v1749_v24 = vld [vmem:[%s481_s16] ss:$0 sm:$0xff]  ;;  %vm747_vm4 = vcmask 1043456   ;;  %vm907_vm5 = vcmask 130112  }
 0x14b   : > { %1824 = vmatprep.subr.bf16.mxu0 %v2495_v2  ;;  %1844 = vmatprep.mubr.msk.bf16.mxu1 %vm2496_vm1, %v2495_v2  ;;  %s2502_s18 = smov 112   ;;  %s2503_s3 = smov 104   ;;  %vm1024_vm6 = vcmask 195712   ;;  %vm1141_vm7 = vcmask 261312  }
 0x14c   : > { %s2504_s16 = smov 56   ;;  %s2505_s29 = smov 64  }
 0x14d   : > { %s2506_s22 = smov 40   ;;  %s2507_s26 = smov 48  }
 0x14e   : > { %1825 = vmatpush3.bf16.msra.mxu0 %v2072_v3  ;;  %s2508_s10 = smov 8   ;;  %s2509_s5 = smov 16  }
 0x14f   : > { %1830 = vmatprep.subr.bf16.mxu0 %v2495_v2  ;;  %s2510_s17 = smov 24   ;;  %s3357_s24 = sld [smem:[#allocation30_spill]] }
 0x150   : > { %s3359_s8 = sld [smem:[#allocation45_spill]] }
 0x151   : > { %1827 = vmatmul.mubr.msk.bf16.vlgmr.msra.gmra.mrb[0].mxu0 %vm628_vm2, %v604_v5 }
 0x152   : > { %1832 = vmatprep.mubr.msk.bf16.mxu0 %vm2496_vm1, %v2495_v2 }
 0x155   : > { %s1780_s28 = sshll.u32 %s3357_s24, 7 }
 0x224   : > { %v666_v7 = vpop.f32.mrb[0].mxu0 }
 0x225   : > { %v667_v8 = vadd.f32 %v1745_v6, %v666_v7  ;;  %v1828_v9 = vpop.f32.mrb[1].mxu0 }
 0x226   : > { %v669_v10 = vpop.f32.mrb[2].mxu0 }
 0x227   : > { %v3073_v11 = vpack.c.bf16 %v667_v8, %v667_v8  ;;  %v1829_v12 = vpop.f32.mrb[3].mxu0 }
 0x229   : > { %792 = vrot.lane.b32.xlu1 %v3073_v11, %s2497_s11  ;;  %680 = vrot.lane.b32.xlu0 %v3073_v11, %s2498_s27  ;;  %s3187_s11 = scalar_lea.hbm %s3359_s8, %s1780_s28  ;;  %s1468_s27 = scalar_lea.sflag [#allocation5], %s3011_s21 }
 0x22d   : > { %911 = vrot.lane.b32.xlu1 %v3073_v11, %s2499_s12  ;;  %794 = vrot.lane.b32.xlu0 %v3073_v11, %s2500_s9 }
 0x231   : > { %1028 = vrot.lane.b32.xlu1 %v3073_v11, %s2501_s20  ;;  %909 = vrot.lane.b32.xlu0 %v3073_v11, %s2502_s18 }
 0x235   : > { %1026 = vrot.lane.b32.xlu0 %v3073_v11, %s2503_s3 }
 0x29b   : > { %v681_v13 = vpop.permute.xlu0 %680  ;;  %v793_v15 = vpop.permute.xlu1 %792 }
 0x29c   : > { %v687_v14 = vsel %vm682_vm3, %v681_v13, 0 }
 0x29d   : > { %1831 = vmatpush3.bf16.xpose.msra.mxu0 %v687_v14 }
 0x29e   : > { %1836 = vmatprep.subr.bf16.mxu0 %v2495_v2 }
 0x29f   : > { %v795_v16 = vpop.permute.xlu0 %794  ;;  %v912_v18 = vpop.permute.xlu1 %911 }
 0x2a0   : > { %v800_v17 = vsel %vm682_vm3, %v795_v16, 0  ;;  %v917_v19 = vsel %vm682_vm3, %v912_v18, 0 }
 0x2a1   : > { %1843 = vmatpush3.bf16.xpose.msra.mxu1 %v800_v17 }
 0x2a2   : > { %1854 = vmatprep.subr.bf16.mxu1 %v2495_v2 }
 0x2a3   : > { %v1029_v20 = vpop.permute.xlu1 %1028  ;;  %v910_v21 = vpop.permute.xlu0 %909 }
 0x2a4   : > { %1833 = vmatmul.mubr.msk.bf16.vlgmr.msra.gmra.mrb[4].mxu0 %vm682_vm3, %v3073_v11  ;;  %v1034_v22 = vsel %vm682_vm3, %v1029_v20, 0 }
 0x2a5   : > { %1838 = vmatprep.mubr.msk.bf16.mxu0 %vm2496_vm1, %v2495_v2 }
 0x2a7   : > { %v1027_v23 = vpop.permute.xlu0 %1026 }
 0x2a8   : > { %1845 = vmatmul.mubr.msk.bf16.vlgmr.msra.gmra.mrb[0].mxu1 %vm682_vm3, %v793_v15 }
 0x2a9   : > { %1855 = vmatpush3.bf16.xpose.msra.mxu1 %v917_v19  ;;  %1856 = vmatprep.mubr.msk.bf16.mxu1 %vm2496_vm1, %v2495_v2 }
 0x2aa   : > { %1866 = vmatprep.subr.bf16.mxu1 %v2495_v2 }
 0x2b0   : > { %1857 = vmatmul.mubr.msk.bf16.vlgmr.msra.gmra.mrb[4].mxu1 %vm682_vm3, %v910_v21 }
 0x2b1   : > { %1867 = vmatpush3.bf16.xpose.msra.mxu1 %v1034_v22  ;;  %1868 = vmatprep.mubr.msk.bf16.mxu1 %vm2496_vm1, %v2495_v2 }
 0x2b2   : > { %1878 = vmatprep.subr.bf16.mxu1 %v2495_v2 }
 0x2b8   : > { %1869 = vmatmul.mubr.msk.bf16.vlgmr.msra.gmra.mrb[8].mxu1 %vm682_vm3, %v1027_v23 }
 0x2b9   : > { %1882 = vmatprep.mubr.msk.bf16.mxu1 %vm2496_vm1, %v2495_v2 }
 0x377   : > { %v723_v25 = vpop.f32.mrb[4].mxu0 }
 0x378   : > { %v724_v26 = vadd.f32 %v1749_v24, %v723_v25  ;;  %v1834_v27 = vpop.f32.mrb[5].mxu0 }
 0x379   : > { %v726_v28 = vpop.f32.mrb[6].mxu0 }
 0x37a   : > { %v1835_v29 = vpop.f32.mrb[7].mxu0  ;;  %v729_v30 = vsel %vm682_vm3, %v724_v26, -inf }
 0x37b   : > { %v836_v31 = vpop.f32.mrb[0].mxu1  ;;  %730 = vmax.xlane.f32.xlu1 %v729_v30 }
 0x37c   : > { %v837_v32 = vadd.f32 %v1749_v24, %v836_v31  ;;  %v1846_v33 = vpop.f32.mrb[1].mxu1 }
 0x37d   : > { %v839_v34 = vpop.f32.mrb[2].mxu1 }
 0x37e   : > { %v1847_v35 = vpop.f32.mrb[3].mxu1  ;;  %v842_v36 = vsel %vm682_vm3, %v837_v32, -inf }
 0x37f   : > { %843 = vmax.xlane.f32.xlu0 %v842_v36 }
 0x383   : > { %v953_v37 = vpop.f32.mrb[4].mxu1 }
 0x384   : > { %v954_v38 = vadd.f32 %v1749_v24, %v953_v37  ;;  %v1858_v39 = vpop.f32.mrb[5].mxu1 }
 0x385   : > { %v956_v40 = vpop.f32.mrb[6].mxu1  ;;  %v2073_v39 = vld [vmem:[%s499_s1] sm:$0xff]  }
 0x386   : > { %v1859_v41 = vpop.f32.mrb[7].mxu1  ;;  %v959_v42 = vsel %vm682_vm3, %v954_v38, -inf  ;;  %1879 = vmatpush3.bf16.msra.mxu1 %v2073_v39  ;;  %v2074_v40 = vld [vmem:[%s499_s1 + $0x8] sm:$0xff]   ;;  %v1764_v39 = vld [vmem:[%s3045_s23 + $0x5] ss:$0 sm:$0xff]  ;;  %s1481_s1 = sshll.u32 %s3052_s15, 4  ;;  %s3189_s1 = int_to_ptr.vmem [resolvable:$true] %s1481_s1 }
 0x387   : > { %960 = vmax.xlane.f32.xlu0 %v959_v42  ;;  %1880 = vmatprep.subr.bf16.mxu1 %v2495_v2  ;;  %s2345_s12 = scalar_lea.vmem %s3189_s1, 128 }
 0x388   : > { %p2346_p12 = scmp.ne.s32.totalorder %s3189_s1, %s2345_s12 }
 0x38a   : > { %1881 = vmatpush3.bf16.msra.mxu1 %v2074_v40 }
 0x38b   : > { %v1070_v43 = vpop.f32.mrb[8].mxu1  ;;  %1894 = vmatprep.subr.bf16.mxu1 %v2495_v2 }
 0x38c   : > { %v1071_v44 = vadd.f32 %v1749_v24, %v1070_v43  ;;  %v1870_v45 = vpop.f32.mrb[9].mxu1 }
 0x38d   : > { %v1073_v46 = vpop.f32.mrb[10].mxu1 }
 0x38e   : > { %v1871_v47 = vpop.f32.mrb[11].mxu1  ;;  %v1076_v48 = vsel %vm682_vm3, %v1071_v44, -inf }
 0x38f   : > { %1077 = vmax.xlane.f32.xlu1 %v1076_v48 }
 0x408   : > { %v731_v49 = vpop.xlane.xlu1 %730 }
 0x409   : > { %v732_v50 = vsub.f32 %v724_v26, %v731_v49 }
 0x40b   : > { %v733_v51 = vmul.f32 1.442695, %v732_v50 }
 0x40c   : > { %v844_v52 = vpop.xlane.xlu0 %843 }
 0x40d   : > { %2085 = vpow2.f32 %v733_v51  ;;  %v845_v53 = vsub.f32 %v837_v32, %v844_v52 }
 0x40f   : > { %v846_v54 = vmul.f32 1.442695, %v845_v53 }
 0x411   : > { %2087 = vpow2.f32 %v846_v54  ;;  %v2511_v54 = vmov 0  }
 0x412   : > { %2070 = vset.pattern.permute.xlu0 %v2511_v54 }
 0x414   : > { %v961_v55 = vpop.xlane.xlu0 %960 }
 0x415   : > { %v962_v56 = vsub.f32 %v954_v38, %v961_v55  ;;  %v1758_v55 = vld [vmem:[%s3045_s23 + $0x1] ss:$0 sm:$0xff] }
 0x417   : > { %v2086_v57 = vpop.eup %2085  ;;  %v963_v58 = vmul.f32 1.442695, %v962_v56 }
 0x418   : > { %v735_v59 = vsel %vm682_vm3, %v2086_v57, 0.0 }
 0x419   : > { %2089 = vpow2.f32 %v963_v58  ;;  %736 = vadd.xlane.f32.xlu0 %v735_v59 }
 0x41b   : > { %v2088_v60 = vpop.eup %2087 }
 0x41c   : > { %v848_v61 = vsel %vm682_vm3, %v2088_v60, 0.0  ;;  %v1078_v0 = vpop.xlane.xlu1 %1077 }
 0x41d   : > { %849 = vadd.xlane.f32.xlu1 %v848_v61  ;;  %v1079_v1 = vsub.f32 %v1071_v44, %v1078_v0 }
 0x41f   : > { %v1080_v3 = vmul.f32 1.442695, %v1079_v1  ;;  %v602_v1 = vld [vmem:[%s473_s19] sm:$0xff]  ;;  %s3358_s19 = sld [smem:[#allocation39_spill]] }
 0x421   : > { %2091 = vpow2.f32 %v1080_v3  ;;  %v2075_v3 = vld [vmem:[%s508_s25] sm:$0xff]  }
 0x423   : > { %v2090_v62 = vpop.eup %2089 }
 0x424   : > { %v965_v63 = vsel %vm682_vm3, %v2090_v62, 0.0 }
 0x425   : > { %966 = vadd.xlane.f32.xlu0 %v965_v63  ;;  %p3360_p6 = scmp.ne.s32.totalorder %s3358_s19, 0 }
 0x427   : > { %p2347_p4 = pnand %p2346_p12, %p3360_p6 }
 0x429   : > { %p2348_p13 = pneg %p2347_p4 }
 0x42b   : > { %v2092_v5 = vpop.eup %2091 }
 0x42c   : > { %v1082_v6 = vsel %vm682_vm3, %v2092_v5, 0.0 }
 0x42e   : > { %855 = vrot.lane.b32.xlu1 %v3073_v11, %s2504_s16 }
 0x43b   : > { %742 = vrot.lane.b32.xlu0 %v3073_v11, %s2505_s29 }
 0x43f   : > { %1089 = vrot.lane.b32.xlu0 %v3073_v11, %s2506_s22 }
 0x452   : > { %1083 = vadd.xlane.f32.xlu1 %v1082_v6  ;;  %v2078_v6 = vld [vmem:[%s3043_s30 + $0x8] sm:$0xff]  }
 0x463   : > { %972 = vrot.lane.b32.xlu1 %v3073_v11, %s2507_s26 }
 0x4a6   : > { %v737_v7 = vpop.xlane.xlu0 %736 }
 0x4a7   : > { %2093 = vrcp.f32 %v737_v7  ;;  %v2079_v7 = vld [vmem:[%s3043_s30 + $0x10] sm:$0xff]  }
 0x4aa   : > { %v850_v8 = vpop.xlane.xlu1 %849 }
 0x4ab   : > { %2095 = vrcp.f32 %v850_v8  ;;  %v2080_v8 = vld [vmem:[%s3043_s30 + $0x18] sm:$0xff]  }
 0x4ae   : > { %v856_v15 = vpop.permute.xlu1 %855 }
 0x4af   : > { %v861_v18 = vsel %vm747_vm4, %v856_v15, 0 }
 0x4b1   : > { %v2094_v9 = vpop.eup %2093 }
 0x4b2   : > { %v967_v10 = vpop.xlane.xlu0 %966  ;;  %v740_v12 = vmul.f32 %v2094_v9, %v2086_v57  ;;  %v2081_v9 = vld [vmem:[%s3043_s30 + $0x20] sm:$0xff]  }
 0x4b3   : > { %2097 = vrcp.f32 %v967_v10  ;;  %v2082_v10 = vld [vmem:[%s3043_s30 + $0x28] sm:$0xff]  }
 0x4b4   : > { %v741_v16 = vpack.c.bf16 %v740_v12, %v740_v12 }
 0x4b5   : > { %v2096_v17 = vpop.eup %2095 }
 0x4b6   : > { %v743_v13 = vpop.permute.xlu0 %742  ;;  %v853_v11 = vmul.f32 %v2096_v17, %v2088_v60 }
 0x4b7   : > { %v749_v14 = vsel %vm747_vm4, %v743_v13, 0 }
 0x4b8   : > { %1837 = vmatpush3.bf16.msra.mxu0 %v749_v14  ;;  %v854_v19 = vpack.c.bf16 %v853_v11, %v853_v11 }
 0x4b9   : > { %1848 = vmatprep.subr.bf16.mxu0 %v2495_v2 }
 0x4ba   : > { %v1090_v25 = vpop.permute.xlu0 %1089 }
 0x4bb   : > { %1839 = vmatmul.mubr.msk.bf16.vlgmr.msra.gmra.mrb[8].mxu0 %vm682_vm3, %v741_v16  ;;  %v1095_v27 = vsel %vm747_vm4, %v1090_v25, 0 }
 0x4bc   : > { %1849 = vmatpush3.bf16.msra.mxu0 %v861_v18  ;;  %1850 = vmatprep.mubr.msk.bf16.mxu0 %vm2496_vm1, %v2495_v2 }
 0x4bd   : > { %1860 = vmatprep.subr.bf16.mxu0 %v2495_v2  ;;  %v2098_v20 = vpop.eup %2097 }
 0x4be   : > { %v970_v22 = vmul.f32 %v2098_v20, %v2090_v62 }
 0x4c0   : > { %v971_v26 = vpack.c.bf16 %v970_v22, %v970_v22 }
 0x4c3   : > { %1851 = vmatmul.mubr.msk.bf16.vlgmr.msra.gmra.mrb[12].mxu0 %vm682_vm3, %v854_v19 }
 0x4c4   : > { %1862 = vmatprep.mubr.msk.bf16.mxu0 %vm2496_vm1, %v2495_v2 }
 0x4df   : > { %v1084_v21 = vpop.xlane.xlu1 %1083 }
 0x4e0   : > { %2099 = vrcp.f32 %v1084_v21  ;;  %v1762_v21 = vld [vmem:[%s3045_s23 + $0x2] ss:$0 sm:$0xff] }
 0x4e3   : > { %v973_v23 = vpop.permute.xlu1 %972 }
 0x4e4   : > { %v978_v24 = vsel %vm747_vm4, %v973_v23, 0  ;;  %v1763_v23 = vld [vmem:[%s3045_s23 + $0x3] ss:$0 sm:$0xff] }
 0x4e5   : > { %1861 = vmatpush3.bf16.msra.mxu0 %v978_v24 }
 0x4e6   : > { %1872 = vmatprep.subr.bf16.mxu0 %v2495_v2 }
 0x4e8   : > { %1863 = vmatmul.mubr.msk.bf16.vlgmr.msra.gmra.mrb[16].mxu0 %vm682_vm3, %v971_v26 }
 0x4e9   : > { %1873 = vmatpush3.bf16.msra.mxu0 %v1095_v27  ;;  %1874 = vmatprep.mubr.msk.bf16.mxu0 %vm2496_vm1, %v2495_v2 }
 0x4ea   : > { %v2100_v28 = vpop.eup %2099  ;;  %1886 = vmatprep.subr.bf16.mxu0 %v2495_v2 }
 0x4eb   : > { %v1087_v29 = vmul.f32 %v2100_v28, %v2092_v5  ;;  %v2077_v5 = vld [vmem:[%s3043_s30] sm:$0xff]  }
 0x4ed   : > { %v1088_v30 = vpack.c.bf16 %v1087_v29, %v1087_v29  ;;  %v2083_v29 = vld [vmem:[%s3043_s30 + $0x30] sm:$0xff]  }
 0x4f0   : > { %1875 = vmatmul.mubr.msk.bf16.vlgmr.msra.gmra.mrb[20].mxu0 %vm682_vm3, %v1088_v30  ;;  %v2084_v30 = vld [vmem:[%s3043_s30 + $0x38] sm:$0xff]  }
 0x4f1   : > { %1890 = vmatprep.mubr.msk.bf16.mxu0 %vm2496_vm1, %v2495_v2  ;;  %1887 = vmatpush3.bf16.msra.mxu0 %v2075_v3 }
 0x4f2   : > { %1888 = vmatprep.subr.bf16.mxu0 %v2495_v2 }
 0x58e   : > { %v785_v31 = vpop.f32.mrb[8].mxu0 }
 0x58f   : > { %791 = vst.msk [vmem:[#allocation2] sm:$0xff] %vm682_vm3, %v785_v31  ;;  %v1840_v32 = vpop.f32.mrb[9].mxu0  ;;  %v1765_v31 = vld [vmem:[%s3045_s23 + $0x4] ss:$0 sm:$0xff] }
 0x590   : > { %v788_v33 = vpop.f32.mrb[10].mxu0 }
 0x591   : > { %v1841_v34 = vpop.f32.mrb[11].mxu0 }
 0x596   : > { %v897_v35 = vpop.f32.mrb[12].mxu0 }
 0x597   : > { %904 = vrot.lane.b32.xlu1 %v897_v35, %s2508_s10  ;;  %v1852_v36 = vpop.f32.mrb[13].mxu0 }
 0x598   : > { %v900_v37 = vpop.f32.mrb[14].mxu0 }
 0x599   : > { %v1853_v38 = vpop.f32.mrb[15].mxu0 }
 0x5bb   : > { %v1014_v41 = vpop.f32.mrb[16].mxu0 }
 0x5bc   : > { %1021 = vrot.lane.b32.xlu0 %v1014_v41, %s2509_s5  ;;  %v1864_v42 = vpop.f32.mrb[17].mxu0 }
 0x5bd   : > { %v1017_v43 = vpop.f32.mrb[18].mxu0 }
 0x5be   : > { %v1865_v44 = vpop.f32.mrb[19].mxu0 }
 0x5c3   : > { %v1131_v45 = vpop.f32.mrb[20].mxu0 }
 0x5c4   : > { %1138 = vrot.lane.b32.xlu1 %v1131_v45, %s2510_s17  ;;  %v1876_v46 = vpop.f32.mrb[21].mxu0 }
 0x5c5   : > { %v1134_v47 = vpop.f32.mrb[22].mxu0 }
 0x5c6   : > { %v1877_v48 = vpop.f32.mrb[23].mxu0 }
 0x609   : > { %v905_v49 = vpop.permute.xlu1 %904 }
 0x60a   : > { %908 = vst.msk [vmem:[#allocation2] sm:$0xff] %vm907_vm5, %v905_v49 }
 0x62e   : > { %v1022_v50 = vpop.permute.xlu0 %1021 }
 0x62f   : > { %1025 = vst.msk [vmem:[#allocation2] sm:$0xff] %vm1024_vm6, %v1022_v50 }
 0x636   : > { %v1139_v51 = vpop.permute.xlu1 %1138 }
 0x637   : > { %1142 = vst.msk [vmem:[#allocation2] sm:$0xff] %vm1141_vm7, %v1139_v51 }
 0x63e   : > { %v1143_v52 = vld [vmem:[#allocation2] sm:$0xff] }
 0x63f   : > { %v1144_v53 = vpack.c.bf16 %v1143_v52, %v1143_v52 }
 0x641   : > { %1883 = vmatmul.mubr.msk.bf16.vlgmr.msra.gmra.mrb[12].mxu1 %vm628_vm2, %v1144_v53 }
 0x642   : > { %1910 = vmatprep.mubr.msk.bf16.mxu1 %vm2496_vm1, %v2495_v2  ;;  %1895 = vmatpush3.bf16.msra.mxu1 %v2077_v5 }
 0x643   : > { %1896 = vmatprep.subr.bf16.mxu1 %v2495_v2 }
 0x646   : > { %1897 = vmatpush3.bf16.msra.mxu1 %v2078_v6 }
 0x647   : > { %1898 = vmatprep.subr.bf16.mxu1 %v2495_v2 }
 0x64a   : > { %1899 = vmatpush3.bf16.msra.mxu1 %v2079_v7 }
 0x64b   : > { %1900 = vmatprep.subr.bf16.mxu1 %v2495_v2 }
 0x64e   : > { %1901 = vmatpush3.bf16.msra.mxu1 %v2080_v8 }
 0x64f   : > { %1902 = vmatprep.subr.bf16.mxu1 %v2495_v2 }
 0x652   : > { %1903 = vmatpush3.bf16.msra.mxu1 %v2081_v9 }
 0x653   : > { %1904 = vmatprep.subr.bf16.mxu1 %v2495_v2 }
 0x656   : > { %1905 = vmatpush3.bf16.msra.mxu1 %v2082_v10 }
 0x657   : > { %1906 = vmatprep.subr.bf16.mxu1 %v2495_v2 }
 0x65a   : > { %1907 = vmatpush3.bf16.msra.mxu1 %v2083_v29 }
 0x65b   : > { %1908 = vmatprep.subr.bf16.mxu1 %v2495_v2 }
 0x65e   : > { %1909 = vmatpush3.bf16.msra.mxu1 %v2084_v30 }
 0x714   : > { %v1205_v56 = vpop.f32.mrb[12].mxu1 }
 0x715   : > { %v1206_v57 = vadd.f32 %v1758_v55, %v1205_v56  ;;  %v1884_v58 = vpop.f32.mrb[13].mxu1 }
 0x716   : > { %v1208_v59 = vpop.f32.mrb[14].mxu1  ;;  %v1777_v58 = vld [vmem:[%s3045_s23 + $0x6] ss:$0 sm:$0xff] }
 0x717   : > { %v1211_v60 = vadd.f32 %v1206_v57, %v3061_v4  ;;  %v1885_v61 = vpop.f32.mrb[15].mxu1  ;;  %v2076_v4 = vld [vmem:[%s508_s25 + $0x8] sm:$0xff]  }
 0x718   : > { %1889 = vmatpush3.bf16.msra.mxu0 %v2076_v4 }
 0x719   : > { %v1212_v62 = vsel %vm628_vm2, %v1211_v60, 0.0  ;;  %v1217_v63 = vmul.f32 %v1211_v60, %v1211_v60 }
 0x71a   : > { %1213 = vadd.xlane.f32.xlu0 %v1212_v62 }
 0x71b   : > { %v1218_v0 = vsel %vm628_vm2, %v1217_v63, 0.0 }
 0x71c   : > { %1219 = vadd.xlane.f32.xlu1 %v1218_v0 }
 0x730   : > { %1247 = vperm.xlu0 %2070, %v602_v1  }
 0x7a7   : > { %v1214_v12 = vpop.xlane.xlu0 %1213 }
 0x7a8   : > { %v1216_v13 = vmul.f32 0.03125, %v1214_v12 }
 0x7a9   : > { %v1220_v14 = vpop.xlane.xlu1 %1219 }
 0x7aa   : > { %v1222_v15 = vmul.f32 %v1216_v13, %v1216_v13  ;;  %v1221_v16 = vmul.f32 0.03125, %v1220_v14  ;;  %v1225_v19 = vsub.f32 %v1211_v60, %v1216_v13  ;;  %v1778_v60 = vld [vmem:[%s3045_s23 + $0x7] ss:$0 sm:$0xff]  ;;  %s2512_s23 = smov [#allocation17]  }
 0x7ab   : > { %s2349_s9 = sshll.u32 %s2512_s23, 4  ;;  %s2350_s9 = int_to_ptr.vmem [resolvable:$false] %s2349_s9 }
 0x7ac   : > { %v1223_v17 = vsub.f32 %v1221_v16, %v1222_v15  ;;  %s2351_s20 = scalar_lea.vmem %s2350_s9, 256  ;;  %p2352_p5 = scmp.lt.s32.totalorder %s3189_s1, %s2350_s9 }
 0x7ad   : > { %p2353_p1 = scmp.lt.s32.totalorder %s2351_s20, %s2345_s12 }
 0x7ae   : > { %v1224_v18 = vmax.f32 %v1223_v17, 0.0 }
 0x7af   : > { %v1248_v25 = vpop.permute.xlu0 %1247  ;;  %p2354_p7 = por %p2353_p1, %p2352_p5 }
 0x7b0   : > { %v1226_v11 = vadd.f32 1e-05, %v1224_v18 }
 0x7b1   : > { %p2355_p9 = pnand %p2354_p7, %p2348_p13 }
 0x7b2   : > { %2101 = vrsqrt.f32 %v1226_v11 }
 0x7bc   : > { %v2102_v20 = vpop.eup %2101 }
 0x7bd   : > { %v1228_v22 = vmul.f32 %v2102_v20, %v1225_v19 }
 0x7bf   : > { %v1236_v24 = vmul.f32 %v1762_v21, %v1228_v22 }
 0x7c1   : > { %v1244_v26 = vadd.f32 %v1763_v23, %v1236_v24 }
 0x7c3   : > { %v1250_v27 = vmul.f32 %v1248_v25, %v1244_v26 }
 0x7c5   : > { %v1251_v28 = vpack.c.bf16 %v1250_v27, %v1250_v27  ;;  %v1259_v40 = vadd.f32 %v1764_v39, %v1250_v27 }
 0x7c7   : > { %1891 = vmatmul.mubr.msk.bf16.vlgmr.msra.gmra.mrb[24].mxu0 %vm628_vm2, %v1251_v28 }
 0x89a   : > { %v1320_v32 = vpop.f32.mrb[24].mxu0 }
 0x89b   : > { %v1321_v33 = vadd.f32 %v1765_v31, %v1320_v32  ;;  %v1892_v34 = vpop.f32.mrb[25].mxu0 }
 0x89c   : > { %v1323_v35 = vpop.f32.mrb[26].mxu0 }
 0x89d   : > { %v1326_v36 = vmax.f32 %v1321_v33, 0.0  ;;  %v1893_v37 = vpop.f32.mrb[27].mxu0 }
 0x89f   : > { %v1327_v38 = vpack.c.bf16 %v1326_v36, %v1326_v36 }
 0x8a1   : > { %1911 = vmatmul.mubr.bf16.vlgmr.msra.gmra.mrb[16].mxu1 %v1327_v38 }
 0x974   : > { %v1426_v41 = vpop.f32.mrb[16].mxu1 }
 0x975   : > { %v1432_v42 = vadd.f32 %v1426_v41, %v1259_v40  ;;  %v1912_v43 = vpop.f32.mrb[17].mxu1 }
 0x976   : > { %v1429_v44 = vpop.f32.mrb[18].mxu1 }
 0x977   : > { %v1913_v45 = vpop.f32.mrb[19].mxu1  ;;  %v1433_v2 = vsel %vm628_vm2, %v1432_v42, 0.0  ;;  %v1437_v46 = vmul.f32 %v1432_v42, %v1432_v42 }
 0x978   : > { %1434 = vadd.xlane.f32.xlu1 %v1433_v2 }
 0x979   : > { %v1438_v47 = vsel %vm628_vm2, %v1437_v46, 0.0 }
 0x97c   : > { %1439 = vadd.xlane.f32.xlu1 %v1438_v47 }
 0xa05   : > { %v1435_v48 = vpop.xlane.xlu1 %1434 }
 0xa06   : > { %v1436_v49 = vmul.f32 0.03125, %v1435_v48 }
 0xa08   : > { %v1442_v51 = vmul.f32 %v1436_v49, %v1436_v49  ;;  %v1445_v56 = vsub.f32 %v1432_v42, %v1436_v49 }
 0xa09   : > { %v1440_v50 = vpop.xlane.xlu1 %1439 }
 0xa0a   : > { %v1441_v52 = vmul.f32 0.03125, %v1440_v50 }
 0xa0c   : > { %v1443_v53 = vsub.f32 %v1441_v52, %v1442_v51 }
 0xa0e   : > { %v1444_v54 = vmax.f32 %v1443_v53, 0.0 }
 0xa10   : > { %v1446_v55 = vadd.f32 1e-05, %v1444_v54 }
 0xa12   : > { %2103 = vrsqrt.f32 %v1446_v55 }
 0xa1c   : > { %v2104_v57 = vpop.eup %2103 }
 0xa1d   : > { %v1448_v59 = vmul.f32 %v2104_v57, %v1445_v56 }
 0xa1f   : > { %v1456_v61 = vmul.f32 %v1777_v58, %v1448_v59 }
 0xa21   : > { %v1464_v62 = vadd.f32 %v1778_v60, %v1456_v61 }
 0xa23   : > { %v1465_v63 = vmul.f32 %v1464_v62, %v1248_v25 }
 0xa25   : > { %1466 = vst.msk [vmem:[%s3052_s15] sm:$0xff] %vm628_vm2, %v1465_v63 }
 0xa26   : > { %2358 = shalt.err (!%p2355_p9)
}
 0xa27   : > { %s2359_s21 = scalar_lea.hbm %s3187_s11, 128  ;;  %s2363_s3 = scalar_lea.hbm %s3359_s8, 256 }
 0xa28   : > { %p2360_p2 = scmp.ne.s32.totalorder %s3187_s11, %s2359_s21  ;;  %p2364_p10 = scmp.lt.u32.totalorder %s3187_s11, %s3359_s8 }
 0xa29   : > { %p2365_p0 = scmp.lt.u32.totalorder %s2363_s3, %s2359_s21  ;;  %p2367_p12 = scmp.lt.u32.totalorder %s2359_s21, %s3187_s11 }
 0xa2a   : > { %p2361_p3 = pnand %p2360_p2, %p3360_p6 }
 0xa2b   : > { %p2366_p8 = por %p2365_p0, %p2364_p10 }
 0xa2c   : > { %p2362_p11 = pneg %p2361_p3 }
 0xa2d   : > { %p2368_p4 = por %p2367_p12, %p2366_p8 }
 0xa2f   : > { %p2369_p13 = pnand %p2368_p4, %p2362_p11 }
 0xa31   : > { %2372 = shalt.err (!%p2369_p13)
}
 0xa32   : > { %1930 = dma.vmem_to_hbm [thread:$0]  (%p3360_p6), %s3189_s1, 128, %s3187_s11, %s1468_s27  }
 0xa33 PF: > { %s3361_s22 = sld [smem:[#allocation31_spill]]  ;;  %s3362_s26 = sld [smem:[#allocation26_spill]] }
 0xa34   : > { %s3363_s10 = sld [smem:[#allocation40_spill]] }
 0xa39   : > { %p1962_p5 = scmp.ge.s32.totalorder %s3361_s22, 2  ;;  %s1493_s5 = sand.u32 1, %s3362_s26  }
 0xa3a   : > { %p3364_p1 = scmp.ne.s32.totalorder %s3363_s10, 0  ;;  %s1494_s17 = scalar_lea.sflag [#allocation5], %s1493_s5 }
 0xa3c   : > { %p1958_p7 = pnand %p1962_p5, %p3364_p1 }
 0xa3e   : > { %2438 = dma.done.wait (!%p1958_p7), %s1494_s17, 128  }
 0xa3f   : > { %2440 = vsyncadd (!%p1958_p7), %s1494_s17, 4294967168  ;;  %s36_s15 = sadd.s32 1, %s3361_s22   ;;  %s3365_s27 = sld [smem:[#allocation24_spill]] }
 0xa40   : > { %p33_p9 = scmp.ge.s32.totalorder %s36_s15, 6   ;;  %s3366_s28 = sld [smem:[#allocation25_spill]] }
 0xa41   : > { %s3367_s29 = sld [smem:[#allocation36_spill]]  ;;  %s3368_s30 = sld [smem:[#allocation27_spill]] }
 0xa42   : > { %s3369_s9 = sld [smem:[#allocation28_spill]]  ;;  %s3370_s10 = sld [smem:[#allocation37_spill]] }
 0xa43   : > { %s3371_s24 = sld [smem:[#allocation33_spill]]  ;;  %s3372_s19 = sld [smem:[#allocation34_spill]] }
 0xa44   : > { %s3373_s11 = smov %s2475_s13  ;;  %s3374_s12 = smov %s2479_s14 }
 0xa45   :  { %35 = sbr.rel (!%p33_p9) target bundleno = 22 (0x16), region = 186 }
 0xa49   : > { %s3375_s13 = smov %s3371_s24  ;;  %s3376_s14 = smov %s3372_s19 }
 0xa4c   :  { %1499 = vsyncpa [#allocation4], 1 }
 0xa4d   :  { %1501 = vsyncpa [#allocation4 + $0x1], 1 }
 0xa4e   :  { %1502 = vsyncpa [#allocation7], 1 }
 0xa4f   :  { %1504 = vsyncpa [#allocation7 + $0x1], 1 }
 0xa50   :  { %1505 = vsyncpa [#allocation10], 1 }
 0xa51   :  { %1507 = vsyncpa [#allocation10 + $0x1], 1 }
 0xa52   :  { %1508 = vsyncpa [#allocation13], 1 }
 0xa53   :  { %1510 = vsyncpa [#allocation13 + $0x1], 1 }
 0xa54   :  { %1511 = vsyncpa [#allocation16], 1 }
 0xa55   :  { %1513 = vsyncpa [#allocation16 + $0x1], 1 }
 0xa56   :  { %1514 = vsyncpa [#allocation5], 1 }
 0xa57   :  { %1516 = vsyncpa [#allocation5 + $0x1], 1 }

</bundles_post_ra>
